<compile_context>
chip_gen: v6e
topology: v6e:2x2x1
jax: 0.10.0
libtpu: 0.0.40
codegen_flags: <defaults>
</compile_context>

<pallas_src>
import functools
import numpy as np
import jax
import jax.numpy as jnp
from jax.experimental import pallas as pl
from jax.experimental.pallas import tpu as pltpu

C_CLASSES = 3          # C in the reference script
K_ANCHORS = 5          # k in the reference script
BN_EPS = 1e-5


def _round_up(x, m):
    return (x + m - 1) // m * m


def _cdiv(a, b):
    return -(-a // b)


def _lanes(n):
    return _round_up(n, 128)     # VMEM lane padding of the last dim


def _vmem_config():
    """(vmem_limit_bytes, per-step tile budget).  Conservative (v7x-safe) by default."""
    try:
        kind = jax.devices()[0].device_kind.lower()
    except Exception:
        kind = ""
    if any(t in kind for t in ("v4", "v5", "v6")):   # 128 MiB VMEM parts
        return 96 * 1024 * 1024, 64 * 1024 * 1024
    return 48 * 1024 * 1024, 40 * 1024 * 1024        # v7x has only 64 MiB VMEM


_VMEM_LIMIT, _TILE_BUDGET = _vmem_config()


# ----------------------------------------------------------------------------
# Pallas kernels
# ----------------------------------------------------------------------------
def _gemm_kernel_k1(a_ref, b_ref, bias_ref, o_ref, *, apply_act):
    """Single-K-step bf16 GEMM: no accumulator scratch, fused BN bias + LeakyReLU."""
    y = jnp.dot(a_ref[...], b_ref[...], preferred_element_type=jnp.float32)
    y = y + bias_ref[...]
    if apply_act:
        y = jnp.maximum(y, 0.1 * y)          # LeakyReLU(0.1)
    o_ref[...] = y.astype(o_ref.dtype)


def _gemm_kernel_acc(a_ref, b_ref, bias_ref, o_ref, acc_ref, *, apply_act):
    """Multi-K-step bf16 GEMM with f32 VMEM accumulation; epilogue fuses bias + act."""
    kk = pl.program_id(2)

    @pl.when(kk == 0)
    def _():
        acc_ref[...] = jnp.zeros_like(acc_ref)

    acc_ref[...] += jnp.dot(a_ref[...], b_ref[...],
                            preferred_element_type=jnp.float32)

    @pl.when(kk == pl.num_programs(2) - 1)
    def _():
        y = acc_ref[...] + bias_ref[...]
        if apply_act:
            y = jnp.maximum(y, 0.1 * y)      # LeakyReLU(0.1)
        o_ref[...] = y.astype(o_ref.dtype)


def _maxpool_kernel(x_ref, o_ref, *, C):
    """2x2/s2 max-pool on a block of contiguous NHWC row-pairs.

    x_ref: (R, 2, Wo, 2*C)  -- [out_row, row_parity, out_col, col_parity*C + c]
    o_ref: (R, Wo, C)
    """
    blk = x_ref[...]
    rm = jnp.maximum(blk[:, 0], blk[:, 1])                 # max over row parity
    o_ref[...] = jnp.maximum(rm[:, :, :C], rm[:, :, C:])   # max over col parity
    # TODO(synk): for C=32/64 stages the store is lane-masked; a lane-dense (R, Wo*C)
    # output would need an in-kernel minor-dim relayout that is riskier than the win.


# ----------------------------------------------------------------------------
# Tile selection + GEMM wrapper
# ----------------------------------------------------------------------------
def _gemm_tiles(M, K, N, tk, out_bytes):
    """Pick (tm, tn) against the per-generation double-buffered VMEM budget."""
    if N < 128:
        tn = N                 # full-width tile (lane-masked store beats padding+slice)
    elif N >= 1024:
        tn = 512               # keep >=2 parallel N blocks for v7x's two TCs
    else:
        tn = N
    multi_k = tk < K

    def cost(tm):
        c = 4 * tm * _lanes(tk)          # A, bf16, double-buffered
        c += 4 * tk * _lanes(tn)         # B, bf16, double-buffered
        c += 2 * out_bytes * tm * _lanes(tn)   # out, double-buffered
        if multi_k:
            c += 4 * tm * _lanes(tn)     # f32 accumulator scratch
        return c

    if M <= 8192 and cost(M) <= _TILE_BUDGET:
        tm = M                           # single M tile: weights stream exactly once
    else:
        tm = 128
        for cand in (32768, 16384, 8192, 4096, 2048, 1024, 512, 256, 128):
            if cost(cand) <= _TILE_BUDGET:
                tm = cand
                break
        tm = min(tm, _round_up(M, 8))    # never larger than needed; keeps 8-alignment

    # v7x megacore: ensure at least one "parallel" grid axis has >= 2 blocks.
    if _cdiv(M, tm) == 1 and _cdiv(N, tn) == 1:
        if N >= 256:
            tn = N // 2
        elif M >= 1024:
            tm = _round_up((M + 1) // 2, 8)
    return tm, tn


def fused_conv_gemm(a, w, bias, *, tk, apply_act, out_dtype):
    """a: (M, K) bf16 im2col patches.  w: (K, N) bf16 (BN scale folded in).
    bias: (1, N) f32.  Returns (M, N) out_dtype.  Ragged M handled by clipped blocks."""
    M, K = a.shape
    _, N = w.shape
    out_bytes = jnp.dtype(out_dtype).itemsize
    tm, tn = _gemm_tiles(M, K, N, tk, out_bytes)
    mi, nj, kk = _cdiv(M, tm), _cdiv(N, tn), K // tk

    cost = pl.CostEstimate(
        flops=2 * M * K * N,
        transcendentals=0,
        bytes_accessed=M * K * 2 + K * N * 2 + M * N * out_bytes)

    if kk == 1:
        return pl.pallas_call(
            functools.partial(_gemm_kernel_k1, apply_act=apply_act),
            out_shape=jax.ShapeDtypeStruct((M, N), out_dtype),
            grid_spec=pltpu.PrefetchScalarGridSpec(
                num_scalar_prefetch=0,
                grid=(mi, nj),
                in_specs=[
                    pl.BlockSpec((tm, K), lambda i, j: (i, 0)),
                    pl.BlockSpec((K, tn), lambda i, j: (0, j)),
                    pl.BlockSpec((1, tn), lambda i, j: (0, j)),
                ],
                out_specs=pl.BlockSpec((tm, tn), lambda i, j: (i, j)),
            ),
            compiler_params=pltpu.CompilerParams(
                dimension_semantics=("parallel", "parallel"),
                vmem_limit_bytes=_VMEM_LIMIT),
            cost_estimate=cost,
        )(a, w, bias)

    return pl.pallas_call(
        functools.partial(_gemm_kernel_acc, apply_act=apply_act),
        out_shape=jax.ShapeDtypeStruct((M, N), out_dtype),
        grid_spec=pltpu.PrefetchScalarGridSpec(
            num_scalar_prefetch=0,
            grid=(mi, nj, kk),
            in_specs=[
                pl.BlockSpec((tm, tk), lambda i, j, k: (i, k)),
                pl.BlockSpec((tk, tn), lambda i, j, k: (k, j)),
                pl.BlockSpec((1, tn), lambda i, j, k: (0, j)),
            ],
            out_specs=pl.BlockSpec((tm, tn), lambda i, j, k: (i, j)),
            scratch_shapes=[pltpu.VMEM((tm, tn), jnp.float32)],
        ),
        compiler_params=pltpu.CompilerParams(
            dimension_semantics=("parallel", "parallel", "arbitrary"),
            vmem_limit_bytes=_VMEM_LIMIT),
        cost_estimate=cost,
    )(a, w, bias)


def maxpool2x2(x):
    """2x2 / stride-2 max-pool, NHWC, as a tiled Pallas kernel.

    The input is viewed (free, contiguous reshape) as (N*Ho, 2, Wo, 2*C) so the kernel
    reads contiguous row-pairs; ragged row blocks are clipped by Pallas."""
    N, H, W, C = x.shape
    Ho, Wo = H // 2, W // 2
    rows = N * Ho
    xr = x.reshape(rows, 2, Wo, 2 * C)

    row_bytes = 2 * W * C * x.dtype.itemsize
    R = 8
    for cand in (2048, 1024, 512, 256, 128, 64, 32, 16, 8):
        if cand * row_bytes <= 8 * 1024 * 1024:      # keep block <= ~8 MB
            R = cand
            break
    R = min(R, rows)

    out = pl.pallas_call(
        functools.partial(_maxpool_kernel, C=C),
        out_shape=jax.ShapeDtypeStruct((rows, Wo, C), x.dtype),
        grid_spec=pltpu.PrefetchScalarGridSpec(
            num_scalar_prefetch=0,
            grid=(_cdiv(rows, R),),
            in_specs=[pl.BlockSpec((R, 2, Wo, 2 * C), lambda i: (i, 0, 0, 0))],
            out_specs=pl.BlockSpec((R, Wo, C), lambda i: (i, 0, 0)),
        ),
        compiler_params=pltpu.CompilerParams(
            dimension_semantics=("parallel",),
            vmem_limit_bytes=_VMEM_LIMIT),
    )(xr)
    return out.reshape(N, Ho, Wo, C)


def im2col(x, ksize, pad):
    """NHWC bf16 -> (N*H*W, ksize*ksize*Cin) bf16 patches (stride 1, same size)."""
    N, H, W, Cin = x.shape
    if ksize == 1:
        return x.reshape(N * H * W, Cin)
    xp = jnp.pad(x, ((0, 0), (pad, pad), (pad, pad), (0, 0)))
    cols = [xp[:, dy:dy + H, dx:dx + W, :]
            for dy in range(ksize) for dx in range(ksize)]
    return jnp.concatenate(cols, axis=-1).reshape(N * H * W, ksize * ksize * Cin)


def apply_cbl(x, p, act=True, out_dtype=jnp.bfloat16):
    N, H, W, _ = x.shape
    a = im2col(x, p['ksize'], p['pad'])
    y = fused_conv_gemm(a, p['w'], p['bias'], tk=p['tk'],
                        apply_act=act, out_dtype=out_dtype)
    return y.reshape(N, H, W, p['N'])


# ----------------------------------------------------------------------------
# Deterministic parameter construction (Conv + folded BatchNorm), packed ONCE
# into the GEMM-ready layout: exact-shape bf16 weights with BN scale folded in.
# ----------------------------------------------------------------------------
def _choose_tk(K):
    if K <= 4608:
        return K                                      # full-K single block
    for cand in (4608, 3840, 3072, 2304, 2048, 1536, 1152, 1024):
        if K % cand == 0:
            return cand
    # TODO(synk): ragged K would need zero-padded activations; never hit by this net.
    return K


def _pack_gemm_params(wmat, scale, bias, ksize):
    """wmat: (K, N) f32 in im2col column order; scale/bias: (N,) folded BN params."""
    K, N = wmat.shape
    wmat = wmat * scale[None, :]                      # fold BN scale into weights
    return dict(w=wmat.astype(jnp.bfloat16),
                bias=bias.reshape(1, N).astype(jnp.float32),
                N=N, tk=_choose_tk(K),
                ksize=ksize, pad=(ksize - 1) // 2)


def init_cbl(key, cin, cout, ksize):
    fan_in = cin * ksize * ksize
    w = jax.random.normal(key, (cout, cin, ksize, ksize), jnp.float32) / np.sqrt(fan_in)
    conv_b = jnp.zeros((cout,), jnp.float32)
    # BN params: gamma=1, beta=0, running_mean=0, running_var=1 (folded)
    scale = jnp.ones((cout,), jnp.float32) / np.sqrt(1.0 + BN_EPS)
    bias = conv_b * scale
    # weight matrix laid out to match im2col column order: [(dy*k+dx)*Cin + cin, cout]
    wmat = jnp.transpose(w, (2, 3, 1, 0)).reshape(ksize * ksize * cin, cout)
    return _pack_gemm_params(wmat, scale, bias, ksize)


def init_params(key):
    # TODO(synk): the reference loads pretrained darknet19 weights from a .pth file;
    # replaced by deterministic random init since no file I/O is allowed here.
    keys = iter(jax.random.split(key, 64))
    p = {}
    p['conv_1'] = [init_cbl(next(keys), 3, 32, 3)]
    p['conv_2'] = [init_cbl(next(keys), 32, 64, 3)]
    p['conv_3'] = [init_cbl(next(keys), 64, 128, 3),
                   init_cbl(next(keys), 128, 64, 1),
                   init_cbl(next(keys), 64, 128, 3)]
    p['conv_4'] = [init_cbl(next(keys), 128, 256, 3),
                   init_cbl(next(keys), 256, 128, 1),
                   init_cbl(next(keys), 128, 256, 3)]
    p['conv_5'] = [init_cbl(next(keys), 256, 512, 3),
                   init_cbl(next(keys), 512, 256, 1),
                   init_cbl(next(keys), 256, 512, 3),
                   init_cbl(next(keys), 512, 256, 1),
                   init_cbl(next(keys), 256, 512, 3)]
    p['conv_6'] = [init_cbl(next(keys), 512, 1024, 3),
                   init_cbl(next(keys), 1024, 512, 1),
                   init_cbl(next(keys), 512, 1024, 3),
                   init_cbl(next(keys), 1024, 512, 1),
                   init_cbl(next(keys), 512, 1024, 3)]
    p['fine_grained'] = [init_cbl(next(keys), 512, 64, 1)]
    p['head_conv1'] = [init_cbl(next(keys), 1024, 1024, 3)]
    p['head_conv2'] = [init_cbl(next(keys), 1024 + 256, 1024, 3)]
    # conv3: plain 1x1 Conv2d with bias, no BN, no activation
    num_out = K_ANCHORS * (5 + C_CLASSES)
    kw, kb = jax.random.split(next(keys))
    w3 = jax.random.normal(kw, (num_out, 1024, 1, 1), jnp.float32) / np.sqrt(1024.0)
    b3 = jax.random.normal(kb, (num_out,), jnp.float32) * 0.01
    w3_mat = jnp.transpose(w3, (2, 3, 1, 0)).reshape(1024, num_out)
    p['head_conv3'] = _pack_gemm_params(w3_mat, jnp.ones((num_out,), jnp.float32),
                                        b3, ksize=1)
    return p


# ----------------------------------------------------------------------------
# Forward pass (mirrors my_YOLOv2.forward)
# ----------------------------------------------------------------------------
def yolov2_forward(params, x_nchw):
    x = jnp.transpose(x_nchw, (0, 2, 3, 1)).astype(jnp.bfloat16)   # NCHW -> NHWC bf16

    def seq(h, layers):
        for l in layers:
            h = apply_cbl(h, l)
        return h

    # DarkNet-19 backbone
    # TODO(synk): fusing the 2x2 maxpool into the preceding conv epilogue would remove
    # one HBM round-trip per stage; kept as a standalone memory-bound kernel here.
    x = maxpool2x2(seq(x, params['conv_1']))
    x = maxpool2x2(seq(x, params['conv_2']))
    x = maxpool2x2(seq(x, params['conv_3']))
    c4 = seq(x, params['conv_4'])
    c5 = seq(maxpool2x2(c4), params['conv_5'])
    c6 = seq(maxpool2x2(c5), params['conv_6'])

    # fine-grained passthrough: replicate the torch view/permute/view exactly (in NCHW)
    fg = apply_cbl(c5, params['fine_grained'][0])
    fg_nchw = jnp.transpose(fg, (0, 3, 1, 2))
    b, c, h, w = fg_nchw.shape
    fg_nchw = fg_nchw.reshape(b, c // 4, h, 2, w, 2)
    fg_nchw = jnp.transpose(fg_nchw, (0, 3, 5, 1, 2, 4))
    fg_nchw = fg_nchw.reshape(b, -1, h // 2, w // 2)
    fg = jnp.transpose(fg_nchw, (0, 2, 3, 1))                      # back to NHWC

    out = apply_cbl(c6, params['head_conv1'][0])
    out = jnp.concatenate([out, fg], axis=-1)                      # torch.cat(dim=1) == NHWC last-axis
    out = apply_cbl(out, params['head_conv2'][0])
    out = apply_cbl(out, params['head_conv3'], act=False,
                    out_dtype=jnp.float32)                         # plain conv head
    return jnp.transpose(out, (0, 3, 1, 2))                        # NHWC -> NCHW


# ----------------------------------------------------------------------------
if __name__ == "__main__":
    key = jax.random.PRNGKey(0)
    k_x, k_p = jax.random.split(key)

    # Spatial size must be divisible by 32 (5 pooling stages + passthrough reorg).
    x = jax.random.normal(k_x, (2, 3, 32, 32), jnp.float32)        # NCHW input
    params = init_params(k_p)

    y = yolov2_forward(params, x)
    y = jax.block_until_ready(y)

    expected = (2, K_ANCHORS * (5 + C_CLASSES), 32 // 32, 32 // 32)
    assert y.shape == expected, (y.shape, expected)
    assert bool(jnp.all(jnp.isfinite(y)))
    print("KERNEL_OK")
</pallas_src>

<mosaic_0001>
module attributes {stable_mosaic.version = 11 : i64} {
  func.func @_gemm_kernel_k1(%arg0: i32, %arg1: i32, %arg2: memref<1024x27xbf16, #tpu.memory_space<vmem>>, %arg3: memref<27x32xbf16, #tpu.memory_space<vmem>>, %arg4: memref<1x32xf32, #tpu.memory_space<vmem>>, %arg5: memref<1024x32xbf16, #tpu.memory_space<vmem>>) attributes {dimension_semantics = [#tpu.dimension_semantics<parallel>, #tpu.dimension_semantics<parallel>], iteration_bounds = array<i64: 2, 1>, scalar_prefetch = 0 : i64, scratch_operands = 0 : i64, tpu.core_type = #tpu.core_type<tc>, window_params = [{transform_indices = @transform_0, window_bounds = array<i64: 1024, 27>}, {transform_indices = @transform_1, window_bounds = array<i64: 27, 32>}, {transform_indices = @transform_2, window_bounds = array<i64: 1, 32>}, {transform_indices = @transform_3, window_bounds = array<i64: 1024, 32>}]} {
    %c0 = arith.constant 0 : index
    %c0_0 = arith.constant 0 : index
    %0 = vector.load %arg2[%c0, %c0_0] : memref<1024x27xbf16, #tpu.memory_space<vmem>>, vector<1024x27xbf16>
    %c0_1 = arith.constant 0 : index
    %c0_2 = arith.constant 0 : index
    %1 = vector.load %arg3[%c0_1, %c0_2] : memref<27x32xbf16, #tpu.memory_space<vmem>>, vector<27x32xbf16>
    %cst = arith.constant dense<0.000000e+00> : vector<1024x32xf32>
    %2 = tpu.matmul %0, %1, %cst {dimension_numbers = #tpu.dot_dimension_numbers<[1], [0], [0], [1], [0, 0, 1, 1], [], []>} : vector<1024x27xbf16>, vector<27x32xbf16>, vector<1024x32xf32> -> vector<1024x32xf32>
    %c0_3 = arith.constant 0 : index
    %c0_4 = arith.constant 0 : index
    %3 = vector.load %arg4[%c0_3, %c0_4] : memref<1x32xf32, #tpu.memory_space<vmem>>, vector<1x32xf32>
    %4 = vector.broadcast %3 : vector<1x32xf32> to vector<1024x32xf32>
    %5 = arith.addf %2, %4 : vector<1024x32xf32>
    %cst_5 = arith.constant 1.000000e-01 : f32
    %6 = vector.broadcast %cst_5 : f32 to vector<1024x32xf32>
    %7 = arith.mulf %6, %5 : vector<1024x32xf32>
    %8 = arith.maximumf %5, %7 : vector<1024x32xf32>
    %9 = arith.truncf %8 : vector<1024x32xf32> to vector<1024x32xbf16>
    %c0_6 = arith.constant 0 : index
    %c0_7 = arith.constant 0 : index
    %10 = vector.load %arg5[%c0_6, %c0_7] : memref<1024x32xbf16, #tpu.memory_space<vmem>>, vector<1024x32xbf16>
    tpu.vector_store %arg5[%c0_6, %c0_7], %9 {strides = array<i32>} : memref<1024x32xbf16, #tpu.memory_space<vmem>>, vector<1024x32xbf16>,
    return
  }
  func.func @transform_0(%arg0: i32, %arg1: i32) -> (i32, i32) {
    %c0_i32 = arith.constant 0 : i32
    %c0_i32_0 = arith.constant 0 : i32
    return %arg0, %c0_i32 : i32, i32
  }
  func.func @transform_1(%arg0: i32, %arg1: i32) -> (i32, i32) {
    %c0_i32 = arith.constant 0 : i32
    %c0_i32_0 = arith.constant 0 : i32
    return %c0_i32, %arg1 : i32, i32
  }
  func.func @transform_2(%arg0: i32, %arg1: i32) -> (i32, i32) {
    %c0_i32 = arith.constant 0 : i32
    %c0_i32_0 = arith.constant 0 : i32
    return %c0_i32, %arg1 : i32, i32
  }
  func.func @transform_3(%arg0: i32, %arg1: i32) -> (i32, i32) {
    %c0_i32 = arith.constant 0 : i32
    return %arg0, %arg1 : i32, i32
  }
}

</mosaic_0001>

<bundles_post_ra>
// kernel: tpu_custom_call.1
= control target key start
LH: loop header
LB: loop body
LE: loop exit
PB: predicated region body
PF: predicated region fallthrough
CT: control target
= control target key end

     0   :  { %s3179_s12 = smov 0   ;;  %s3181_s13 = smov 0   ;;  %s3751_s0 = inlined_call_operand.vmem [shape: bf16[2048,27], index: 0, kind: input, shape index: {}]   ;;  %s3752_s1 = inlined_call_operand.vmem [shape: bf16[27,32], index: 1, kind: input, shape index: {}]   ;;  %s3753_s2 = inlined_call_operand.vmem [shape: f32[1,32], index: 2, kind: input, shape index: {}]   ;;  %s3754_s3 = inlined_call_operand.vmem [shape: bf16[2048,32], index: 3, kind: output, shape index: {}]  }
   0x1   :  { %s3183_s14 = smov 0  }
   0x2 LB: > { %s25_s15 = sadd.s32 1, %s3152_s13  ;;  %p2446_p0 = scmp.ge.s32.totalorder %s3156_s14, 1  ;;  %s3156_s14 = sphi %s3183_s14, %s13_s14   ;;  %s3152_s13 = sphi %s3181_s13, %s3756_s13   ;;  %s3148_s12 = sphi %s3179_s12, %s3755_s12  }
   0x3   : > { %p27_p1 = scmp.ge.s32.totalorder %s25_s15, 2  ;;  %p169_p2 = scmp.lt.s32.totalorder %s3156_s14, 3 }
   0x5   : > { %s3758_s15 = smov (%p27_p1, %s25_s15), 0  ;;  %p170_p3 = pnand %p2446_p0, %p169_p2 }
   0x6   : > { %s2447_s18 = sshll.u32 (!%p170_p3), %s3148_s12, 7 }
   0x7   : > { %173 = sbr.rel (%p170_p3) target bundleno = 355 (0x163), region = 32  ;;  %p204_p4 = scmp.lt.s32.totalorder (!%p170_p3), %s2447_s18, 255 }
   0xc   : > { %v3067_v0 = vld [vmem:[%s3752_s1 + $0x8] sm:$0x3f]   ;;  %vm889_vm0 = vcmask 1044480   ;;  %vm890_vm1 = vcmask 1045504   ;;  %v3158_v1 = vmov 65535   ;;  %v3068_v5 = vld [vmem:[%s3752_s1] sm:$0xff]  }
   0xd   : > { %v891_v2 = vsel %vm889_vm0, 4294967295, %v3158_v1  ;;  %s3760_s18 = smov (!%p204_p4, %s2447_s18), 255  ;;  %vm696_vm2 = vcmask 220160   ;;  %vm2209_vm3 = vcmask 257024  }
   0xe   : > { %v892_v3 = vsel %vm890_vm1, %v891_v2, 0  ;;  %s2448_s21 = sshll.u32 %s3760_s18, 2 }
   0xf   : > { %v894_v4 = vand.u32 %v3067_v0, %v892_v3  ;;  %s3211_s24 = scalar_lea.vmem %s3751_s0, %s2448_s21  ;;  %s3355_s29 = scalar_lea.vmem %s3754_s3, %s2448_s21 }
  0x10   : > { %v3069_v6 = vld [vmem:[%s3211_s24] sm:$0xff]   ;;  %v3071_v8 = vld [vmem:[%s3211_s24 + $0x8] sm:$0xff]   ;;  %v3073_v10 = vld [vmem:[%s3211_s24 + $0x10] sm:$0xff]  }
  0x11   : > { %2906 = vmatprep.subr.bf16.mxu0 %v894_v4  ;;  %3038 = vmatprep.subr.bf16.mxu1 %v894_v4  ;;  %v3070_v7 = vld [vmem:[%s3211_s24 + $0x100] sm:$0xff]   ;;  %v3072_v9 = vld [vmem:[%s3211_s24 + $0x108] sm:$0xff]   ;;  %v3074_v11 = vld [vmem:[%s3211_s24 + $0x110] sm:$0xff]  }
  0x12   : > { %2907 = vmatpush3.bf16.msra.mxu0 %v894_v4  ;;  %3040 = vmatpush3.bf16.msra.mxu1 %v894_v4  ;;  %v3075_v12 = vld [vmem:[%s3211_s24 + $0x18] sm:$0xff]   ;;  %v3077_v14 = vld [vmem:[%s3211_s24 + $0x20] sm:$0xff]   ;;  %v3079_v16 = vld [vmem:[%s3211_s24 + $0x28] sm:$0xff]  }
  0x13   : > { %2908 = vmatprep.subr.bf16.mxu0 %v3068_v5  ;;  %3039 = vmatprep.subr.bf16.mxu1 %v3068_v5  ;;  %v3076_v13 = vld [vmem:[%s3211_s24 + $0x118] sm:$0xff]   ;;  %v3078_v15 = vld [vmem:[%s3211_s24 + $0x120] sm:$0xff]   ;;  %v3080_v17 = vld [vmem:[%s3211_s24 + $0x128] sm:$0xff]  }
  0x14   : > { %2910 = vmatprep.mubr.msk.bf16.mxu0 %vm696_vm2, %v3069_v6  ;;  %2974 = vmatprep.mubr.msk.bf16.mxu1 %vm696_vm2, %v3070_v7  ;;  %v3081_v18 = vld [vmem:[%s3211_s24 + $0x30] sm:$0xff]   ;;  %v3083_v20 = vld [vmem:[%s3211_s24 + $0x38] sm:$0xff]   ;;  %v3085_v22 = vld [vmem:[%s3211_s24 + $0x40] sm:$0xff]  }
  0x15   : > { %v3082_v19 = vld [vmem:[%s3211_s24 + $0x130] sm:$0xff]   ;;  %v3084_v21 = vld [vmem:[%s3211_s24 + $0x138] sm:$0xff]   ;;  %v3086_v23 = vld [vmem:[%s3211_s24 + $0x140] sm:$0xff]  }
  0x16   : > { %2909 = vmatpush3.bf16.msra.mxu0 %v3068_v5  ;;  %3041 = vmatpush3.bf16.msra.mxu1 %v3068_v5  ;;  %v3087_v24 = vld [vmem:[%s3211_s24 + $0x48] sm:$0xff]   ;;  %v3089_v26 = vld [vmem:[%s3211_s24 + $0x50] sm:$0xff]   ;;  %v3091_v28 = vld [vmem:[%s3211_s24 + $0x58] sm:$0xff]  }
  0x17   : > { %v3088_v25 = vld [vmem:[%s3211_s24 + $0x148] sm:$0xff]   ;;  %v3090_v27 = vld [vmem:[%s3211_s24 + $0x150] sm:$0xff]   ;;  %v3092_v29 = vld [vmem:[%s3211_s24 + $0x158] sm:$0xff]  }
  0x18   : > { %v3093_v30 = vld [vmem:[%s3211_s24 + $0x60] sm:$0xff]   ;;  %v3095_v32 = vld [vmem:[%s3211_s24 + $0x68] sm:$0xff]   ;;  %v3097_v34 = vld [vmem:[%s3211_s24 + $0x70] sm:$0xff]  }
  0x19   : > { %2911 = vmatmul.mubr.msk.bf16.vlgmr.msra.gmra.mxu0 %vm696_vm2, %v3071_v8  ;;  %2975 = vmatmul.mubr.msk.bf16.vlgmr.msra.gmra.mxu1 %vm696_vm2, %v3072_v9  ;;  %v3094_v31 = vld [vmem:[%s3211_s24 + $0x160] sm:$0xff]   ;;  %v3096_v33 = vld [vmem:[%s3211_s24 + $0x168] sm:$0xff]   ;;  %v3098_v35 = vld [vmem:[%s3211_s24 + $0x170] sm:$0xff]  }
  0x1a   : > { %2914 = vmatprep.mubr.msk.bf16.mxu0 %vm696_vm2, %v3073_v10  ;;  %2978 = vmatprep.mubr.msk.bf16.mxu1 %vm696_vm2, %v3074_v11  ;;  %v3099_v36 = vld [vmem:[%s3211_s24 + $0x78] sm:$0xff]   ;;  %v3101_v38 = vld [vmem:[%s3211_s24 + $0x80] sm:$0xff]   ;;  %v3103_v40 = vld [vmem:[%s3211_s24 + $0x88] sm:$0xff]  }
  0x1b   : > { %v3100_v37 = vld [vmem:[%s3211_s24 + $0x178] sm:$0xff]   ;;  %v3102_v39 = vld [vmem:[%s3211_s24 + $0x180] sm:$0xff]   ;;  %v3104_v41 = vld [vmem:[%s3211_s24 + $0x188] sm:$0xff]  }
  0x1c   : > { %v3105_v42 = vld [vmem:[%s3211_s24 + $0x90] sm:$0xff]   ;;  %v3107_v44 = vld [vmem:[%s3211_s24 + $0x98] sm:$0xff]   ;;  %v3109_v46 = vld [vmem:[%s3211_s24 + $0xa0] sm:$0xff]  }
  0x1d   : > { %v3106_v43 = vld [vmem:[%s3211_s24 + $0x190] sm:$0xff]   ;;  %v3108_v45 = vld [vmem:[%s3211_s24 + $0x198] sm:$0xff]   ;;  %v3110_v47 = vld [vmem:[%s3211_s24 + $0x1a0] sm:$0xff]  }
  0x1e   : > { %v3111_v48 = vld [vmem:[%s3211_s24 + $0xa8] sm:$0xff]   ;;  %v3113_v50 = vld [vmem:[%s3211_s24 + $0xb0] sm:$0xff]   ;;  %v3115_v52 = vld [vmem:[%s3211_s24 + $0xb8] sm:$0xff]  }
  0x1f   : > { %v3112_v49 = vld [vmem:[%s3211_s24 + $0x1a8] sm:$0xff]   ;;  %v3114_v51 = vld [vmem:[%s3211_s24 + $0x1b0] sm:$0xff]   ;;  %v3116_v53 = vld [vmem:[%s3211_s24 + $0x1b8] sm:$0xff]  }
  0x20   : > { %v3117_v54 = vld [vmem:[%s3211_s24 + $0xc0] sm:$0xff]   ;;  %v3119_v56 = vld [vmem:[%s3211_s24 + $0xc8] sm:$0xff]   ;;  %v3121_v58 = vld [vmem:[%s3211_s24 + $0xd0] sm:$0xff]  }
  0x21   : > { %2915 = vmatmul.mubr.msk.bf16.gmra.mxu0 %vm696_vm2, %v3075_v12  ;;  %2979 = vmatmul.mubr.msk.bf16.gmra.mxu1 %vm696_vm2, %v3076_v13  ;;  %v3118_v55 = vld [vmem:[%s3211_s24 + $0x1c0] sm:$0xff]   ;;  %v3120_v57 = vld [vmem:[%s3211_s24 + $0x1c8] sm:$0xff]   ;;  %v3122_v59 = vld [vmem:[%s3211_s24 + $0x1d0] sm:$0xff]  }
  0x22   : > { %2918 = vmatprep.mubr.msk.bf16.mxu0 %vm696_vm2, %v3077_v14  ;;  %2982 = vmatprep.mubr.msk.bf16.mxu1 %vm696_vm2, %v3078_v15  ;;  %v3123_v60 = vld [vmem:[%s3211_s24 + $0xd8] sm:$0xff]   ;;  %v3125_v62 = vld [vmem:[%s3211_s24 + $0xe0] sm:$0xff]   ;;  %v3127_v0 = vld [vmem:[%s3211_s24 + $0xe8] sm:$0xff]  }
  0x23   : > { %v3124_v61 = vld [vmem:[%s3211_s24 + $0x1d8] sm:$0xff]   ;;  %v3126_v63 = vld [vmem:[%s3211_s24 + $0x1e0] sm:$0xff]   ;;  %v3128_v1 = vld [vmem:[%s3211_s24 + $0x1e8] sm:$0xff]  }
  0x24   : > { %v3129_v2 = vld [vmem:[%s3211_s24 + $0xf0] sm:$0xff]   ;;  %v3131_v4 = vld [vmem:[%s3211_s24 + $0xf8] sm:$0xff]   ;;  %v3344_v6 = vld [vmem:[%s3753_s2] ss:$0 sm:$0xff] }
  0x25   : > { %v3130_v3 = vld [vmem:[%s3211_s24 + $0x1f0] sm:$0xff]   ;;  %v3132_v5 = vld [vmem:[%s3211_s24 + $0x1f8] sm:$0xff]  }
  0x29   : > { %2919 = vmatmul.mubr.msk.bf16.gmra.mxu0 %vm696_vm2, %v3079_v16  ;;  %2983 = vmatmul.mubr.msk.bf16.gmra.mxu1 %vm696_vm2, %v3080_v17 }
  0x2a   : > { %2922 = vmatprep.mubr.msk.bf16.mxu0 %vm696_vm2, %v3081_v18  ;;  %2986 = vmatprep.mubr.msk.bf16.mxu1 %vm696_vm2, %v3082_v19 }
  0x31   : > { %2923 = vmatmul.mubr.msk.bf16.gmra.mxu0 %vm696_vm2, %v3083_v20  ;;  %2987 = vmatmul.mubr.msk.bf16.gmra.mxu1 %vm696_vm2, %v3084_v21 }
  0x32   : > { %2926 = vmatprep.mubr.msk.bf16.mxu0 %vm696_vm2, %v3085_v22  ;;  %2990 = vmatprep.mubr.msk.bf16.mxu1 %vm696_vm2, %v3086_v23 }
  0x39   : > { %2927 = vmatmul.mubr.msk.bf16.gmra.mxu0 %vm696_vm2, %v3087_v24  ;;  %2991 = vmatmul.mubr.msk.bf16.gmra.mxu1 %vm696_vm2, %v3088_v25 }
  0x3a   : > { %2930 = vmatprep.mubr.msk.bf16.mxu0 %vm696_vm2, %v3089_v26  ;;  %2994 = vmatprep.mubr.msk.bf16.mxu1 %vm696_vm2, %v3090_v27 }
  0x41   : > { %2931 = vmatmul.mubr.msk.bf16.gmra.mxu0 %vm696_vm2, %v3091_v28  ;;  %2995 = vmatmul.mubr.msk.bf16.gmra.mxu1 %vm696_vm2, %v3092_v29 }
  0x42   : > { %2934 = vmatprep.mubr.msk.bf16.mxu0 %vm696_vm2, %v3093_v30  ;;  %2998 = vmatprep.mubr.msk.bf16.mxu1 %vm696_vm2, %v3094_v31 }
  0x49   : > { %2935 = vmatmul.mubr.msk.bf16.gmra.mxu0 %vm696_vm2, %v3095_v32  ;;  %2999 = vmatmul.mubr.msk.bf16.gmra.mxu1 %vm696_vm2, %v3096_v33 }
  0x4a   : > { %2938 = vmatprep.mubr.msk.bf16.mxu0 %vm696_vm2, %v3097_v34  ;;  %3002 = vmatprep.mubr.msk.bf16.mxu1 %vm696_vm2, %v3098_v35 }
  0x51   : > { %2939 = vmatmul.mubr.msk.bf16.gmra.mxu0 %vm696_vm2, %v3099_v36  ;;  %3003 = vmatmul.mubr.msk.bf16.gmra.mxu1 %vm696_vm2, %v3100_v37 }
  0x52   : > { %2942 = vmatprep.mubr.msk.bf16.mxu0 %vm696_vm2, %v3101_v38  ;;  %3006 = vmatprep.mubr.msk.bf16.mxu1 %vm696_vm2, %v3102_v39 }
  0x59   : > { %2943 = vmatmul.mubr.msk.bf16.gmra.mxu0 %vm696_vm2, %v3103_v40  ;;  %3007 = vmatmul.mubr.msk.bf16.gmra.mxu1 %vm696_vm2, %v3104_v41 }
  0x5a   : > { %2946 = vmatprep.mubr.msk.bf16.mxu0 %vm696_vm2, %v3105_v42  ;;  %3010 = vmatprep.mubr.msk.bf16.mxu1 %vm696_vm2, %v3106_v43 }
  0x61   : > { %2947 = vmatmul.mubr.msk.bf16.gmra.mxu0 %vm696_vm2, %v3107_v44  ;;  %3011 = vmatmul.mubr.msk.bf16.gmra.mxu1 %vm696_vm2, %v3108_v45 }
  0x62   : > { %2950 = vmatprep.mubr.msk.bf16.mxu0 %vm696_vm2, %v3109_v46  ;;  %3014 = vmatprep.mubr.msk.bf16.mxu1 %vm696_vm2, %v3110_v47 }
  0x69   : > { %2951 = vmatmul.mubr.msk.bf16.gmra.mxu0 %vm696_vm2, %v3111_v48  ;;  %3015 = vmatmul.mubr.msk.bf16.gmra.mxu1 %vm696_vm2, %v3112_v49 }
  0x6a   : > { %2954 = vmatprep.mubr.msk.bf16.mxu0 %vm696_vm2, %v3113_v50  ;;  %3018 = vmatprep.mubr.msk.bf16.mxu1 %vm696_vm2, %v3114_v51 }
  0x71   : > { %2955 = vmatmul.mubr.msk.bf16.gmra.mxu0 %vm696_vm2, %v3115_v52  ;;  %3019 = vmatmul.mubr.msk.bf16.gmra.mxu1 %vm696_vm2, %v3116_v53 }
  0x72   : > { %2958 = vmatprep.mubr.msk.bf16.mxu0 %vm696_vm2, %v3117_v54  ;;  %3022 = vmatprep.mubr.msk.bf16.mxu1 %vm696_vm2, %v3118_v55 }
  0x79   : > { %2959 = vmatmul.mubr.msk.bf16.gmra.mxu0 %vm696_vm2, %v3119_v56  ;;  %3023 = vmatmul.mubr.msk.bf16.gmra.mxu1 %vm696_vm2, %v3120_v57 }
  0x7a   : > { %2962 = vmatprep.mubr.msk.bf16.mxu0 %vm696_vm2, %v3121_v58  ;;  %3026 = vmatprep.mubr.msk.bf16.mxu1 %vm696_vm2, %v3122_v59 }
  0x81   : > { %2963 = vmatmul.mubr.msk.bf16.gmra.mxu0 %vm696_vm2, %v3123_v60  ;;  %3027 = vmatmul.mubr.msk.bf16.gmra.mxu1 %vm696_vm2, %v3124_v61 }
  0x82   : > { %2966 = vmatprep.mubr.msk.bf16.mxu0 %vm696_vm2, %v3125_v62  ;;  %3030 = vmatprep.mubr.msk.bf16.mxu1 %vm696_vm2, %v3126_v63 }
  0x89   : > { %2967 = vmatmul.mubr.msk.bf16.gmra.mxu0 %vm696_vm2, %v3127_v0  ;;  %3031 = vmatmul.mubr.msk.bf16.gmra.mxu1 %vm696_vm2, %v3128_v1 }
  0x8a   : > { %2970 = vmatprep.mubr.msk.bf16.mxu0 %vm696_vm2, %v3129_v2  ;;  %3034 = vmatprep.mubr.msk.bf16.mxu1 %vm696_vm2, %v3130_v3 }
  0x91   : > { %2971 = vmatmul.mubr.msk.bf16.gmra.mxu0 %vm696_vm2, %v3131_v4  ;;  %3035 = vmatmul.mubr.msk.bf16.gmra.mxu1 %vm696_vm2, %v3132_v5 }
  0xd9   : > { %v2912_v7 = vpop.f32.mrf.mxu0  ;;  %v2976_v8 = vpop.f32.mrf.mxu1 }
  0xda   : > { %v939_v9 = vadd.f32 %v2912_v7, %v3344_v6  ;;  %v1195_v10 = vadd.f32 %v2976_v8, %v3344_v6 }
  0xdb   : > { %v930_v11 = vpop.f32.mrf.mxu0  ;;  %v1186_v12 = vpop.f32.mrf.mxu1 }
  0xdc   : > { %v1443_v13 = vmul.f32 0.1, %v939_v9  ;;  %v1507_v14 = vmul.f32 0.1, %v1195_v10  ;;  %v931_v15 = vadd.f32 %v3344_v6, %v930_v11  ;;  %v1187_v16 = vadd.f32 %v3344_v6, %v1186_v12 }
  0xdd   : > { %v2913_v17 = vpop.f32.mrf.mxu0  ;;  %v2977_v18 = vpop.f32.mrf.mxu1 }
  0xde   : > { %v1571_v19 = vmax.f32 %v939_v9, %v1443_v13  ;;  %v1635_v20 = vmax.f32 %v1195_v10, %v1507_v14  ;;  %v1441_v21 = vmul.f32 0.1, %v931_v15  ;;  %v1505_v22 = vmul.f32 0.1, %v1187_v16 }
  0xdf   : > { %v942_v23 = vadd.f32 %v2913_v17, %v3344_v6  ;;  %v1198_v24 = vadd.f32 %v2977_v18, %v3344_v6  ;;  %v933_v25 = vpop.f32.mrf.mxu0  ;;  %v1189_v26 = vpop.f32.mrf.mxu1 }
  0xe0   : > { %v2714_v27 = vpack.c.bf16 %v1571_v19, %v1571_v19  ;;  %v2778_v28 = vpack.c.bf16 %v1635_v20, %v1635_v20  ;;  %v1569_v29 = vmax.f32 %v931_v15, %v1441_v21  ;;  %v1633_v30 = vmax.f32 %v1187_v16, %v1505_v22 }
  0xe1   : > { %v1444_v31 = vmul.f32 0.1, %v942_v23  ;;  %v1508_v32 = vmul.f32 0.1, %v1198_v24  ;;  %v934_v33 = vadd.f32 %v3344_v6, %v933_v25  ;;  %v1190_v34 = vadd.f32 %v3344_v6, %v1189_v26  ;;  %v2916_v35 = vpop.f32.mrf.mxu0  ;;  %v2980_v36 = vpop.f32.mrf.mxu1 }
  0xe2   : > { %2212 = vst.msk [vmem:[%s3355_s29 + $0x8] sm:$0xf] %vm2209_vm3, %v2714_v27  ;;  %2276 = vst.msk [vmem:[%s3355_s29 + $0x108] sm:$0xf] %vm2209_vm3, %v2778_v28  ;;  %v2712_v37 = vpack.c.bf16 %v1569_v29, %v1569_v29  ;;  %v2776_v38 = vpack.c.bf16 %v1633_v30, %v1633_v30  ;;  %v955_v39 = vadd.f32 %v2916_v35, %v3344_v6 }
  0xe3   : > { %v1211_v40 = vadd.f32 %v2980_v36, %v3344_v6  ;;  %v1572_v41 = vmax.f32 %v942_v23, %v1444_v31  ;;  %v1636_v42 = vmax.f32 %v1198_v24, %v1508_v32  ;;  %v1442_v43 = vmul.f32 0.1, %v934_v33  ;;  %v946_v45 = vpop.f32.mrf.mxu0  ;;  %v1202_v46 = vpop.f32.mrf.mxu1 }
  0xe4   : > { %v1506_v44 = vmul.f32 0.1, %v1190_v34  ;;  %2210 = vst.msk [vmem:[%s3355_s29] sm:$0xf] %vm2209_vm3, %v2712_v37  ;;  %2274 = vst.msk [vmem:[%s3355_s29 + $0x100] sm:$0xf] %vm2209_vm3, %v2776_v38  ;;  %v947_v49 = vadd.f32 %v3344_v6, %v946_v45  ;;  %v1203_v50 = vadd.f32 %v3344_v6, %v1202_v46 }
  0xe5   : > { %v1447_v47 = vmul.f32 0.1, %v955_v39  ;;  %v1511_v48 = vmul.f32 0.1, %v1211_v40  ;;  %v2715_v51 = vpack.c.bf16 %v1572_v41, %v1572_v41  ;;  %v2779_v52 = vpack.c.bf16 %v1636_v42, %v1636_v42  ;;  %v2917_v55 = vpop.f32.mrf.mxu0  ;;  %v2981_v56 = vpop.f32.mrf.mxu1 }
  0xe6   : > { %v1570_v53 = vmax.f32 %v934_v33, %v1442_v43  ;;  %v1634_v54 = vmax.f32 %v1190_v34, %v1506_v44  ;;  %v1445_v59 = vmul.f32 0.1, %v947_v49  ;;  %v1509_v60 = vmul.f32 0.1, %v1203_v50 }
  0xe7   : > { %v1575_v57 = vmax.f32 %v955_v39, %v1447_v47  ;;  %v1639_v58 = vmax.f32 %v1211_v40, %v1511_v48  ;;  %2213 = vst.msk [vmem:[%s3355_s29 + $0xc] sm:$0xf] %vm2209_vm3, %v2715_v51  ;;  %2277 = vst.msk [vmem:[%s3355_s29 + $0x10c] sm:$0xf] %vm2209_vm3, %v2779_v52  ;;  %v958_v63 = vadd.f32 %v2917_v55, %v3344_v6  ;;  %v949_v1 = vpop.f32.mrf.mxu0  ;;  %v1205_v2 = vpop.f32.mrf.mxu1 }
  0xe8   : > { %v2713_v61 = vpack.c.bf16 %v1570_v53, %v1570_v53  ;;  %v2777_v62 = vpack.c.bf16 %v1634_v54, %v1634_v54  ;;  %v1214_v0 = vadd.f32 %v2981_v56, %v3344_v6  ;;  %v1573_v5 = vmax.f32 %v947_v49, %v1445_v59 }
  0xe9   : > { %v2718_v3 = vpack.c.bf16 %v1575_v57, %v1575_v57  ;;  %v2782_v4 = vpack.c.bf16 %v1639_v58, %v1639_v58  ;;  %v1637_v7 = vmax.f32 %v1203_v50, %v1509_v60  ;;  %v1448_v8 = vmul.f32 0.1, %v958_v63  ;;  %v2920_v12 = vpop.f32.mrf.mxu0  ;;  %v2984_v13 = vpop.f32.mrf.mxu1 }
  0xea   : > { %2211 = vst.msk [vmem:[%s3355_s29 + $0x4] sm:$0xf] %vm2209_vm3, %v2713_v61  ;;  %2275 = vst.msk [vmem:[%s3355_s29 + $0x104] sm:$0xf] %vm2209_vm3, %v2777_v62  ;;  %v1512_v9 = vmul.f32 0.1, %v1214_v0  ;;  %v950_v10 = vadd.f32 %v3344_v6, %v949_v1  ;;  %v1206_v11 = vadd.f32 %v3344_v6, %v1205_v2  ;;  %v2716_v14 = vpack.c.bf16 %v1573_v5, %v1573_v5 }
  0xeb   : > { %2216 = vst.msk [vmem:[%s3355_s29 + $0x18] sm:$0xf] %vm2209_vm3, %v2718_v3  ;;  %2280 = vst.msk [vmem:[%s3355_s29 + $0x118] sm:$0xf] %vm2209_vm3, %v2782_v4  ;;  %v2780_v15 = vpack.c.bf16 %v1637_v7, %v1637_v7  ;;  %v971_v16 = vadd.f32 %v2920_v12, %v3344_v6  ;;  %v1227_v17 = vadd.f32 %v2984_v13, %v3344_v6  ;;  %v962_v22 = vpop.f32.mrf.mxu0  ;;  %v1218_v23 = vpop.f32.mrf.mxu1 }
  0xec   : > { %v1576_v18 = vmax.f32 %v958_v63, %v1448_v8  ;;  %v1640_v19 = vmax.f32 %v1214_v0, %v1512_v9  ;;  %v1446_v20 = vmul.f32 0.1, %v950_v10  ;;  %v1510_v21 = vmul.f32 0.1, %v1206_v11  ;;  %2214 = vst.msk [vmem:[%s3355_s29 + $0x10] sm:$0xf] %vm2209_vm3, %v2716_v14 }
  0xed   : > { %2278 = vst.msk [vmem:[%s3355_s29 + $0x110] sm:$0xf] %vm2209_vm3, %v2780_v15  ;;  %v1451_v24 = vmul.f32 0.1, %v971_v16  ;;  %v1515_v25 = vmul.f32 0.1, %v1227_v17  ;;  %v963_v26 = vadd.f32 %v3344_v6, %v962_v22  ;;  %v1219_v27 = vadd.f32 %v3344_v6, %v1218_v23  ;;  %v2921_v32 = vpop.f32.mrf.mxu0  ;;  %v2985_v33 = vpop.f32.mrf.mxu1 }
  0xee   : > { %v2719_v28 = vpack.c.bf16 %v1576_v18, %v1576_v18  ;;  %v2783_v29 = vpack.c.bf16 %v1640_v19, %v1640_v19  ;;  %v1574_v30 = vmax.f32 %v950_v10, %v1446_v20  ;;  %v1638_v31 = vmax.f32 %v1206_v11, %v1510_v21 }
  0xef   : > { %v1579_v34 = vmax.f32 %v971_v16, %v1451_v24  ;;  %v1643_v35 = vmax.f32 %v1227_v17, %v1515_v25  ;;  %v1449_v36 = vmul.f32 0.1, %v963_v26  ;;  %v1513_v37 = vmul.f32 0.1, %v1219_v27  ;;  %v965_v42 = vpop.f32.mrf.mxu0  ;;  %v1221_v43 = vpop.f32.mrf.mxu1 }
  0xf0   : > { %2217 = vst.msk [vmem:[%s3355_s29 + $0x1c] sm:$0xf] %vm2209_vm3, %v2719_v28  ;;  %2281 = vst.msk [vmem:[%s3355_s29 + $0x11c] sm:$0xf] %vm2209_vm3, %v2783_v29  ;;  %v2717_v38 = vpack.c.bf16 %v1574_v30, %v1574_v30  ;;  %v2781_v39 = vpack.c.bf16 %v1638_v31, %v1638_v31  ;;  %v974_v40 = vadd.f32 %v2921_v32, %v3344_v6 }
  0xf1   : > { %v1230_v41 = vadd.f32 %v2985_v33, %v3344_v6  ;;  %v2722_v44 = vpack.c.bf16 %v1579_v34, %v1579_v34  ;;  %v2786_v45 = vpack.c.bf16 %v1643_v35, %v1643_v35  ;;  %v1577_v46 = vmax.f32 %v963_v26, %v1449_v36  ;;  %v2924_v52 = vpop.f32.mrf.mxu0  ;;  %v2988_v53 = vpop.f32.mrf.mxu1 }
  0xf2   : > { %v1641_v47 = vmax.f32 %v1219_v27, %v1513_v37  ;;  %2215 = vst.msk [vmem:[%s3355_s29 + $0x14] sm:$0xf] %vm2209_vm3, %v2717_v38  ;;  %2279 = vst.msk [vmem:[%s3355_s29 + $0x114] sm:$0xf] %vm2209_vm3, %v2781_v39  ;;  %v1452_v48 = vmul.f32 0.1, %v974_v40  ;;  %v966_v50 = vadd.f32 %v3344_v6, %v965_v42  ;;  %v1222_v51 = vadd.f32 %v3344_v6, %v1221_v43 }
  0xf3   : > { %v1516_v49 = vmul.f32 0.1, %v1230_v41  ;;  %2220 = vst.msk [vmem:[%s3355_s29 + $0x28] sm:$0xf] %vm2209_vm3, %v2722_v44  ;;  %2284 = vst.msk [vmem:[%s3355_s29 + $0x128] sm:$0xf] %vm2209_vm3, %v2786_v45  ;;  %v2720_v54 = vpack.c.bf16 %v1577_v46, %v1577_v46  ;;  %v987_v56 = vadd.f32 %v2924_v52, %v3344_v6  ;;  %v1243_v57 = vadd.f32 %v2988_v53, %v3344_v6  ;;  %v978_v62 = vpop.f32.mrf.mxu0  ;;  %v1234_v63 = vpop.f32.mrf.mxu1 }
  0xf4   : > { %v2784_v55 = vpack.c.bf16 %v1641_v47, %v1641_v47  ;;  %v1580_v58 = vmax.f32 %v974_v40, %v1452_v48  ;;  %v1450_v60 = vmul.f32 0.1, %v966_v50  ;;  %v1514_v61 = vmul.f32 0.1, %v1222_v51 }
  0xf5   : > { %v1644_v59 = vmax.f32 %v1230_v41, %v1516_v49  ;;  %2218 = vst.msk [vmem:[%s3355_s29 + $0x20] sm:$0xf] %vm2209_vm3, %v2720_v54  ;;  %v1455_v0 = vmul.f32 0.1, %v987_v56  ;;  %v1519_v1 = vmul.f32 0.1, %v1243_v57  ;;  %v979_v2 = vadd.f32 %v3344_v6, %v978_v62  ;;  %v2925_v9 = vpop.f32.mrf.mxu0  ;;  %v2989_v10 = vpop.f32.mrf.mxu1 }
  0xf6   : > { %2282 = vst.msk [vmem:[%s3355_s29 + $0x120] sm:$0xf] %vm2209_vm3, %v2784_v55  ;;  %v1235_v3 = vadd.f32 %v3344_v6, %v1234_v63  ;;  %v2723_v4 = vpack.c.bf16 %v1580_v58, %v1580_v58  ;;  %v1578_v7 = vmax.f32 %v966_v50, %v1450_v60  ;;  %v1642_v8 = vmax.f32 %v1222_v51, %v1514_v61 }
  0xf7   : > { %v2787_v5 = vpack.c.bf16 %v1644_v59, %v1644_v59  ;;  %v1583_v11 = vmax.f32 %v987_v56, %v1455_v0  ;;  %v1647_v12 = vmax.f32 %v1243_v57, %v1519_v1  ;;  %v1453_v13 = vmul.f32 0.1, %v979_v2  ;;  %v981_v19 = vpop.f32.mrf.mxu0  ;;  %v1237_v20 = vpop.f32.mrf.mxu1 }
  0xf8   : > { %v1517_v14 = vmul.f32 0.1, %v1235_v3  ;;  %2221 = vst.msk [vmem:[%s3355_s29 + $0x2c] sm:$0xf] %vm2209_vm3, %v2723_v4  ;;  %v2721_v15 = vpack.c.bf16 %v1578_v7, %v1578_v7  ;;  %v2785_v16 = vpack.c.bf16 %v1642_v8, %v1642_v8  ;;  %v990_v17 = vadd.f32 %v2925_v9, %v3344_v6 }
  0xf9   : > { %2285 = vst.msk [vmem:[%s3355_s29 + $0x12c] sm:$0xf] %vm2209_vm3, %v2787_v5  ;;  %v1246_v18 = vadd.f32 %v2989_v10, %v3344_v6  ;;  %v2726_v21 = vpack.c.bf16 %v1583_v11, %v1583_v11  ;;  %v2790_v22 = vpack.c.bf16 %v1647_v12, %v1647_v12  ;;  %v1581_v23 = vmax.f32 %v979_v2, %v1453_v13  ;;  %v2928_v29 = vpop.f32.mrf.mxu0  ;;  %v2992_v30 = vpop.f32.mrf.mxu1 }
  0xfa   : > { %v1645_v24 = vmax.f32 %v1235_v3, %v1517_v14  ;;  %2219 = vst.msk [vmem:[%s3355_s29 + $0x24] sm:$0xf] %vm2209_vm3, %v2721_v15  ;;  %2283 = vst.msk [vmem:[%s3355_s29 + $0x124] sm:$0xf] %vm2209_vm3, %v2785_v16  ;;  %v1456_v25 = vmul.f32 0.1, %v990_v17  ;;  %v982_v27 = vadd.f32 %v3344_v6, %v981_v19  ;;  %v1238_v28 = vadd.f32 %v3344_v6, %v1237_v20 }
  0xfb   : > { %v1520_v26 = vmul.f32 0.1, %v1246_v18  ;;  %2224 = vst.msk [vmem:[%s3355_s29 + $0x38] sm:$0xf] %vm2209_vm3, %v2726_v21  ;;  %2288 = vst.msk [vmem:[%s3355_s29 + $0x138] sm:$0xf] %vm2209_vm3, %v2790_v22  ;;  %v2724_v31 = vpack.c.bf16 %v1581_v23, %v1581_v23  ;;  %v1003_v33 = vadd.f32 %v2928_v29, %v3344_v6  ;;  %v1259_v34 = vadd.f32 %v2992_v30, %v3344_v6  ;;  %v994_v39 = vpop.f32.mrf.mxu0  ;;  %v1250_v40 = vpop.f32.mrf.mxu1 }
  0xfc   : > { %v2788_v32 = vpack.c.bf16 %v1645_v24, %v1645_v24  ;;  %v1584_v35 = vmax.f32 %v990_v17, %v1456_v25  ;;  %v1454_v37 = vmul.f32 0.1, %v982_v27  ;;  %v1518_v38 = vmul.f32 0.1, %v1238_v28 }
  0xfd   : > { %v1648_v36 = vmax.f32 %v1246_v18, %v1520_v26  ;;  %2222 = vst.msk [vmem:[%s3355_s29 + $0x30] sm:$0xf] %vm2209_vm3, %v2724_v31  ;;  %v1459_v41 = vmul.f32 0.1, %v1003_v33  ;;  %v1523_v42 = vmul.f32 0.1, %v1259_v34  ;;  %v995_v43 = vadd.f32 %v3344_v6, %v994_v39  ;;  %v2929_v49 = vpop.f32.mrf.mxu0  ;;  %v2993_v50 = vpop.f32.mrf.mxu1 }
  0xfe   : > { %2286 = vst.msk [vmem:[%s3355_s29 + $0x130] sm:$0xf] %vm2209_vm3, %v2788_v32  ;;  %v1251_v44 = vadd.f32 %v3344_v6, %v1250_v40  ;;  %v2727_v45 = vpack.c.bf16 %v1584_v35, %v1584_v35  ;;  %v1582_v47 = vmax.f32 %v982_v27, %v1454_v37  ;;  %v1646_v48 = vmax.f32 %v1238_v28, %v1518_v38 }
  0xff   : > { %v2791_v46 = vpack.c.bf16 %v1648_v36, %v1648_v36  ;;  %v1587_v51 = vmax.f32 %v1003_v33, %v1459_v41  ;;  %v1651_v52 = vmax.f32 %v1259_v34, %v1523_v42  ;;  %v1457_v53 = vmul.f32 0.1, %v995_v43  ;;  %v997_v59 = vpop.f32.mrf.mxu0  ;;  %v1253_v60 = vpop.f32.mrf.mxu1 }
 0x100   : > { %v1521_v54 = vmul.f32 0.1, %v1251_v44  ;;  %2225 = vst.msk [vmem:[%s3355_s29 + $0x3c] sm:$0xf] %vm2209_vm3, %v2727_v45  ;;  %v2725_v55 = vpack.c.bf16 %v1582_v47, %v1582_v47  ;;  %v2789_v56 = vpack.c.bf16 %v1646_v48, %v1646_v48  ;;  %v1006_v57 = vadd.f32 %v2929_v49, %v3344_v6 }
 0x101   : > { %2289 = vst.msk [vmem:[%s3355_s29 + $0x13c] sm:$0xf] %vm2209_vm3, %v2791_v46  ;;  %v1262_v58 = vadd.f32 %v2993_v50, %v3344_v6  ;;  %v2730_v61 = vpack.c.bf16 %v1587_v51, %v1587_v51  ;;  %v2794_v62 = vpack.c.bf16 %v1651_v52, %v1651_v52  ;;  %v1585_v63 = vmax.f32 %v995_v43, %v1457_v53  ;;  %v2932_v5 = vpop.f32.mrf.mxu0  ;;  %v2996_v7 = vpop.f32.mrf.mxu1 }
 0x102   : > { %v1649_v0 = vmax.f32 %v1251_v44, %v1521_v54  ;;  %2223 = vst.msk [vmem:[%s3355_s29 + $0x34] sm:$0xf] %vm2209_vm3, %v2725_v55  ;;  %2287 = vst.msk [vmem:[%s3355_s29 + $0x134] sm:$0xf] %vm2209_vm3, %v2789_v56  ;;  %v1460_v1 = vmul.f32 0.1, %v1006_v57  ;;  %v998_v3 = vadd.f32 %v3344_v6, %v997_v59  ;;  %v1254_v4 = vadd.f32 %v3344_v6, %v1253_v60 }
 0x103   : > { %v1524_v2 = vmul.f32 0.1, %v1262_v58  ;;  %2228 = vst.msk [vmem:[%s3355_s29 + $0x48] sm:$0xf] %vm2209_vm3, %v2730_v61  ;;  %2292 = vst.msk [vmem:[%s3355_s29 + $0x148] sm:$0xf] %vm2209_vm3, %v2794_v62  ;;  %v2728_v8 = vpack.c.bf16 %v1585_v63, %v1585_v63  ;;  %v1019_v10 = vadd.f32 %v2932_v5, %v3344_v6  ;;  %v1275_v11 = vadd.f32 %v2996_v7, %v3344_v6  ;;  %v1010_v16 = vpop.f32.mrf.mxu0  ;;  %v1266_v17 = vpop.f32.mrf.mxu1 }
 0x104   : > { %v2792_v9 = vpack.c.bf16 %v1649_v0, %v1649_v0  ;;  %v1588_v12 = vmax.f32 %v1006_v57, %v1460_v1  ;;  %v1458_v14 = vmul.f32 0.1, %v998_v3  ;;  %v1522_v15 = vmul.f32 0.1, %v1254_v4 }
 0x105   : > { %v1652_v13 = vmax.f32 %v1262_v58, %v1524_v2  ;;  %2226 = vst.msk [vmem:[%s3355_s29 + $0x40] sm:$0xf] %vm2209_vm3, %v2728_v8  ;;  %v1463_v18 = vmul.f32 0.1, %v1019_v10  ;;  %v1527_v19 = vmul.f32 0.1, %v1275_v11  ;;  %v1011_v20 = vadd.f32 %v3344_v6, %v1010_v16  ;;  %v2933_v26 = vpop.f32.mrf.mxu0  ;;  %v2997_v27 = vpop.f32.mrf.mxu1 }
 0x106   : > { %2290 = vst.msk [vmem:[%s3355_s29 + $0x140] sm:$0xf] %vm2209_vm3, %v2792_v9  ;;  %v1267_v21 = vadd.f32 %v3344_v6, %v1266_v17  ;;  %v2731_v22 = vpack.c.bf16 %v1588_v12, %v1588_v12  ;;  %v1586_v24 = vmax.f32 %v998_v3, %v1458_v14  ;;  %v1650_v25 = vmax.f32 %v1254_v4, %v1522_v15 }
 0x107   : > { %v2795_v23 = vpack.c.bf16 %v1652_v13, %v1652_v13  ;;  %v1591_v28 = vmax.f32 %v1019_v10, %v1463_v18  ;;  %v1655_v29 = vmax.f32 %v1275_v11, %v1527_v19  ;;  %v1461_v30 = vmul.f32 0.1, %v1011_v20  ;;  %v1013_v36 = vpop.f32.mrf.mxu0  ;;  %v1269_v37 = vpop.f32.mrf.mxu1 }
 0x108   : > { %v1525_v31 = vmul.f32 0.1, %v1267_v21  ;;  %2229 = vst.msk [vmem:[%s3355_s29 + $0x4c] sm:$0xf] %vm2209_vm3, %v2731_v22  ;;  %v2729_v32 = vpack.c.bf16 %v1586_v24, %v1586_v24  ;;  %v2793_v33 = vpack.c.bf16 %v1650_v25, %v1650_v25  ;;  %v1022_v34 = vadd.f32 %v2933_v26, %v3344_v6 }
 0x109   : > { %2293 = vst.msk [vmem:[%s3355_s29 + $0x14c] sm:$0xf] %vm2209_vm3, %v2795_v23  ;;  %v1278_v35 = vadd.f32 %v2997_v27, %v3344_v6  ;;  %v2734_v38 = vpack.c.bf16 %v1591_v28, %v1591_v28  ;;  %v2798_v39 = vpack.c.bf16 %v1655_v29, %v1655_v29  ;;  %v1589_v40 = vmax.f32 %v1011_v20, %v1461_v30  ;;  %v2936_v46 = vpop.f32.mrf.mxu0  ;;  %v3000_v47 = vpop.f32.mrf.mxu1 }
 0x10a   : > { %v1653_v41 = vmax.f32 %v1267_v21, %v1525_v31  ;;  %2227 = vst.msk [vmem:[%s3355_s29 + $0x44] sm:$0xf] %vm2209_vm3, %v2729_v32  ;;  %2291 = vst.msk [vmem:[%s3355_s29 + $0x144] sm:$0xf] %vm2209_vm3, %v2793_v33  ;;  %v1464_v42 = vmul.f32 0.1, %v1022_v34  ;;  %v1014_v44 = vadd.f32 %v3344_v6, %v1013_v36  ;;  %v1270_v45 = vadd.f32 %v3344_v6, %v1269_v37 }
 0x10b   : > { %v1528_v43 = vmul.f32 0.1, %v1278_v35  ;;  %2232 = vst.msk [vmem:[%s3355_s29 + $0x58] sm:$0xf] %vm2209_vm3, %v2734_v38  ;;  %2296 = vst.msk [vmem:[%s3355_s29 + $0x158] sm:$0xf] %vm2209_vm3, %v2798_v39  ;;  %v2732_v48 = vpack.c.bf16 %v1589_v40, %v1589_v40  ;;  %v1035_v50 = vadd.f32 %v2936_v46, %v3344_v6  ;;  %v1291_v51 = vadd.f32 %v3000_v47, %v3344_v6  ;;  %v1026_v56 = vpop.f32.mrf.mxu0  ;;  %v1282_v57 = vpop.f32.mrf.mxu1 }
 0x10c   : > { %v2796_v49 = vpack.c.bf16 %v1653_v41, %v1653_v41  ;;  %v1592_v52 = vmax.f32 %v1022_v34, %v1464_v42  ;;  %v1462_v54 = vmul.f32 0.1, %v1014_v44  ;;  %v1526_v55 = vmul.f32 0.1, %v1270_v45 }
 0x10d   : > { %v1656_v53 = vmax.f32 %v1278_v35, %v1528_v43  ;;  %2230 = vst.msk [vmem:[%s3355_s29 + $0x50] sm:$0xf] %vm2209_vm3, %v2732_v48  ;;  %v1467_v58 = vmul.f32 0.1, %v1035_v50  ;;  %v1531_v59 = vmul.f32 0.1, %v1291_v51  ;;  %v1027_v60 = vadd.f32 %v3344_v6, %v1026_v56  ;;  %v2937_v2 = vpop.f32.mrf.mxu0  ;;  %v3001_v3 = vpop.f32.mrf.mxu1 }
 0x10e   : > { %2294 = vst.msk [vmem:[%s3355_s29 + $0x150] sm:$0xf] %vm2209_vm3, %v2796_v49  ;;  %v1283_v61 = vadd.f32 %v3344_v6, %v1282_v57  ;;  %v2735_v62 = vpack.c.bf16 %v1592_v52, %v1592_v52  ;;  %v1590_v0 = vmax.f32 %v1014_v44, %v1462_v54  ;;  %v1654_v1 = vmax.f32 %v1270_v45, %v1526_v55 }
 0x10f   : > { %v2799_v63 = vpack.c.bf16 %v1656_v53, %v1656_v53  ;;  %v1595_v4 = vmax.f32 %v1035_v50, %v1467_v58  ;;  %v1659_v5 = vmax.f32 %v1291_v51, %v1531_v59  ;;  %v1465_v7 = vmul.f32 0.1, %v1027_v60  ;;  %v1029_v13 = vpop.f32.mrf.mxu0  ;;  %v1285_v14 = vpop.f32.mrf.mxu1 }
 0x110   : > { %v1529_v8 = vmul.f32 0.1, %v1283_v61  ;;  %2233 = vst.msk [vmem:[%s3355_s29 + $0x5c] sm:$0xf] %vm2209_vm3, %v2735_v62  ;;  %v2733_v9 = vpack.c.bf16 %v1590_v0, %v1590_v0  ;;  %v2797_v10 = vpack.c.bf16 %v1654_v1, %v1654_v1  ;;  %v1038_v11 = vadd.f32 %v2937_v2, %v3344_v6 }
 0x111   : > { %2297 = vst.msk [vmem:[%s3355_s29 + $0x15c] sm:$0xf] %vm2209_vm3, %v2799_v63  ;;  %v1294_v12 = vadd.f32 %v3001_v3, %v3344_v6  ;;  %v2738_v15 = vpack.c.bf16 %v1595_v4, %v1595_v4  ;;  %v2802_v16 = vpack.c.bf16 %v1659_v5, %v1659_v5  ;;  %v1593_v17 = vmax.f32 %v1027_v60, %v1465_v7  ;;  %v2940_v23 = vpop.f32.mrf.mxu0  ;;  %v3004_v24 = vpop.f32.mrf.mxu1 }
 0x112   : > { %v1657_v18 = vmax.f32 %v1283_v61, %v1529_v8  ;;  %2231 = vst.msk [vmem:[%s3355_s29 + $0x54] sm:$0xf] %vm2209_vm3, %v2733_v9  ;;  %2295 = vst.msk [vmem:[%s3355_s29 + $0x154] sm:$0xf] %vm2209_vm3, %v2797_v10  ;;  %v1468_v19 = vmul.f32 0.1, %v1038_v11  ;;  %v1030_v21 = vadd.f32 %v3344_v6, %v1029_v13  ;;  %v1286_v22 = vadd.f32 %v3344_v6, %v1285_v14 }
 0x113   : > { %v1532_v20 = vmul.f32 0.1, %v1294_v12  ;;  %2236 = vst.msk [vmem:[%s3355_s29 + $0x68] sm:$0xf] %vm2209_vm3, %v2738_v15  ;;  %2300 = vst.msk [vmem:[%s3355_s29 + $0x168] sm:$0xf] %vm2209_vm3, %v2802_v16  ;;  %v2736_v25 = vpack.c.bf16 %v1593_v17, %v1593_v17  ;;  %v1051_v27 = vadd.f32 %v2940_v23, %v3344_v6  ;;  %v1307_v28 = vadd.f32 %v3004_v24, %v3344_v6  ;;  %v1042_v33 = vpop.f32.mrf.mxu0  ;;  %v1298_v34 = vpop.f32.mrf.mxu1 }
 0x114   : > { %v2800_v26 = vpack.c.bf16 %v1657_v18, %v1657_v18  ;;  %v1596_v29 = vmax.f32 %v1038_v11, %v1468_v19  ;;  %v1466_v31 = vmul.f32 0.1, %v1030_v21  ;;  %v1530_v32 = vmul.f32 0.1, %v1286_v22 }
 0x115   : > { %v1660_v30 = vmax.f32 %v1294_v12, %v1532_v20  ;;  %2234 = vst.msk [vmem:[%s3355_s29 + $0x60] sm:$0xf] %vm2209_vm3, %v2736_v25  ;;  %v1471_v35 = vmul.f32 0.1, %v1051_v27  ;;  %v1535_v36 = vmul.f32 0.1, %v1307_v28  ;;  %v1043_v37 = vadd.f32 %v3344_v6, %v1042_v33  ;;  %v2941_v43 = vpop.f32.mrf.mxu0  ;;  %v3005_v44 = vpop.f32.mrf.mxu1 }
 0x116   : > { %2298 = vst.msk [vmem:[%s3355_s29 + $0x160] sm:$0xf] %vm2209_vm3, %v2800_v26  ;;  %v1299_v38 = vadd.f32 %v3344_v6, %v1298_v34  ;;  %v2739_v39 = vpack.c.bf16 %v1596_v29, %v1596_v29  ;;  %v1594_v41 = vmax.f32 %v1030_v21, %v1466_v31  ;;  %v1658_v42 = vmax.f32 %v1286_v22, %v1530_v32 }
 0x117   : > { %v2803_v40 = vpack.c.bf16 %v1660_v30, %v1660_v30  ;;  %v1599_v45 = vmax.f32 %v1051_v27, %v1471_v35  ;;  %v1663_v46 = vmax.f32 %v1307_v28, %v1535_v36  ;;  %v1469_v47 = vmul.f32 0.1, %v1043_v37  ;;  %v1045_v53 = vpop.f32.mrf.mxu0  ;;  %v1301_v54 = vpop.f32.mrf.mxu1 }
 0x118   : > { %v1533_v48 = vmul.f32 0.1, %v1299_v38  ;;  %2237 = vst.msk [vmem:[%s3355_s29 + $0x6c] sm:$0xf] %vm2209_vm3, %v2739_v39  ;;  %v2737_v49 = vpack.c.bf16 %v1594_v41, %v1594_v41  ;;  %v2801_v50 = vpack.c.bf16 %v1658_v42, %v1658_v42  ;;  %v1054_v51 = vadd.f32 %v2941_v43, %v3344_v6 }
 0x119   : > { %2301 = vst.msk [vmem:[%s3355_s29 + $0x16c] sm:$0xf] %vm2209_vm3, %v2803_v40  ;;  %v1310_v52 = vadd.f32 %v3005_v44, %v3344_v6  ;;  %v2742_v55 = vpack.c.bf16 %v1599_v45, %v1599_v45  ;;  %v2806_v56 = vpack.c.bf16 %v1663_v46, %v1663_v46  ;;  %v1597_v57 = vmax.f32 %v1043_v37, %v1469_v47  ;;  %v2944_v63 = vpop.f32.mrf.mxu0  ;;  %v3008_v0 = vpop.f32.mrf.mxu1 }
 0x11a   : > { %v1661_v58 = vmax.f32 %v1299_v38, %v1533_v48  ;;  %2235 = vst.msk [vmem:[%s3355_s29 + $0x64] sm:$0xf] %vm2209_vm3, %v2737_v49  ;;  %2299 = vst.msk [vmem:[%s3355_s29 + $0x164] sm:$0xf] %vm2209_vm3, %v2801_v50  ;;  %v1472_v59 = vmul.f32 0.1, %v1054_v51  ;;  %v1046_v61 = vadd.f32 %v3344_v6, %v1045_v53  ;;  %v1302_v62 = vadd.f32 %v3344_v6, %v1301_v54 }
 0x11b   : > { %v1536_v60 = vmul.f32 0.1, %v1310_v52  ;;  %2240 = vst.msk [vmem:[%s3355_s29 + $0x78] sm:$0xf] %vm2209_vm3, %v2742_v55  ;;  %2304 = vst.msk [vmem:[%s3355_s29 + $0x178] sm:$0xf] %vm2209_vm3, %v2806_v56  ;;  %v2740_v1 = vpack.c.bf16 %v1597_v57, %v1597_v57  ;;  %v1067_v3 = vadd.f32 %v2944_v63, %v3344_v6  ;;  %v1323_v4 = vadd.f32 %v3008_v0, %v3344_v6  ;;  %v1058_v10 = vpop.f32.mrf.mxu0  ;;  %v1314_v11 = vpop.f32.mrf.mxu1 }
 0x11c   : > { %v2804_v2 = vpack.c.bf16 %v1661_v58, %v1661_v58  ;;  %v1600_v5 = vmax.f32 %v1054_v51, %v1472_v59  ;;  %v1470_v8 = vmul.f32 0.1, %v1046_v61  ;;  %v1534_v9 = vmul.f32 0.1, %v1302_v62 }
 0x11d   : > { %v1664_v7 = vmax.f32 %v1310_v52, %v1536_v60  ;;  %2238 = vst.msk [vmem:[%s3355_s29 + $0x70] sm:$0xf] %vm2209_vm3, %v2740_v1  ;;  %v1475_v12 = vmul.f32 0.1, %v1067_v3  ;;  %v1539_v13 = vmul.f32 0.1, %v1323_v4  ;;  %v1059_v14 = vadd.f32 %v3344_v6, %v1058_v10  ;;  %v2945_v20 = vpop.f32.mrf.mxu0  ;;  %v3009_v21 = vpop.f32.mrf.mxu1 }
 0x11e   : > { %2302 = vst.msk [vmem:[%s3355_s29 + $0x170] sm:$0xf] %vm2209_vm3, %v2804_v2  ;;  %v1315_v15 = vadd.f32 %v3344_v6, %v1314_v11  ;;  %v2743_v16 = vpack.c.bf16 %v1600_v5, %v1600_v5  ;;  %v1598_v18 = vmax.f32 %v1046_v61, %v1470_v8  ;;  %v1662_v19 = vmax.f32 %v1302_v62, %v1534_v9 }
 0x11f   : > { %v2807_v17 = vpack.c.bf16 %v1664_v7, %v1664_v7  ;;  %v1603_v22 = vmax.f32 %v1067_v3, %v1475_v12  ;;  %v1667_v23 = vmax.f32 %v1323_v4, %v1539_v13  ;;  %v1473_v24 = vmul.f32 0.1, %v1059_v14  ;;  %v1061_v30 = vpop.f32.mrf.mxu0  ;;  %v1317_v31 = vpop.f32.mrf.mxu1 }
 0x120   : > { %v1537_v25 = vmul.f32 0.1, %v1315_v15  ;;  %2241 = vst.msk [vmem:[%s3355_s29 + $0x7c] sm:$0xf] %vm2209_vm3, %v2743_v16  ;;  %v2741_v26 = vpack.c.bf16 %v1598_v18, %v1598_v18  ;;  %v2805_v27 = vpack.c.bf16 %v1662_v19, %v1662_v19  ;;  %v1070_v28 = vadd.f32 %v2945_v20, %v3344_v6 }
 0x121   : > { %2305 = vst.msk [vmem:[%s3355_s29 + $0x17c] sm:$0xf] %vm2209_vm3, %v2807_v17  ;;  %v1326_v29 = vadd.f32 %v3009_v21, %v3344_v6  ;;  %v2746_v32 = vpack.c.bf16 %v1603_v22, %v1603_v22  ;;  %v2810_v33 = vpack.c.bf16 %v1667_v23, %v1667_v23  ;;  %v1601_v34 = vmax.f32 %v1059_v14, %v1473_v24  ;;  %v2948_v40 = vpop.f32.mrf.mxu0  ;;  %v3012_v41 = vpop.f32.mrf.mxu1 }
 0x122   : > { %v1665_v35 = vmax.f32 %v1315_v15, %v1537_v25  ;;  %2239 = vst.msk [vmem:[%s3355_s29 + $0x74] sm:$0xf] %vm2209_vm3, %v2741_v26  ;;  %2303 = vst.msk [vmem:[%s3355_s29 + $0x174] sm:$0xf] %vm2209_vm3, %v2805_v27  ;;  %v1476_v36 = vmul.f32 0.1, %v1070_v28  ;;  %v1062_v38 = vadd.f32 %v3344_v6, %v1061_v30  ;;  %v1318_v39 = vadd.f32 %v3344_v6, %v1317_v31 }
 0x123   : > { %v1540_v37 = vmul.f32 0.1, %v1326_v29  ;;  %2244 = vst.msk [vmem:[%s3355_s29 + $0x88] sm:$0xf] %vm2209_vm3, %v2746_v32  ;;  %2308 = vst.msk [vmem:[%s3355_s29 + $0x188] sm:$0xf] %vm2209_vm3, %v2810_v33  ;;  %v2744_v42 = vpack.c.bf16 %v1601_v34, %v1601_v34  ;;  %v1083_v44 = vadd.f32 %v2948_v40, %v3344_v6  ;;  %v1339_v45 = vadd.f32 %v3012_v41, %v3344_v6  ;;  %v1074_v50 = vpop.f32.mrf.mxu0  ;;  %v1330_v51 = vpop.f32.mrf.mxu1 }
 0x124   : > { %v2808_v43 = vpack.c.bf16 %v1665_v35, %v1665_v35  ;;  %v1604_v46 = vmax.f32 %v1070_v28, %v1476_v36  ;;  %v1474_v48 = vmul.f32 0.1, %v1062_v38  ;;  %v1538_v49 = vmul.f32 0.1, %v1318_v39 }
 0x125   : > { %v1668_v47 = vmax.f32 %v1326_v29, %v1540_v37  ;;  %2242 = vst.msk [vmem:[%s3355_s29 + $0x80] sm:$0xf] %vm2209_vm3, %v2744_v42  ;;  %v1479_v52 = vmul.f32 0.1, %v1083_v44  ;;  %v1543_v53 = vmul.f32 0.1, %v1339_v45  ;;  %v1075_v54 = vadd.f32 %v3344_v6, %v1074_v50  ;;  %v2949_v60 = vpop.f32.mrf.mxu0  ;;  %v3013_v61 = vpop.f32.mrf.mxu1 }
 0x126   : > { %2306 = vst.msk [vmem:[%s3355_s29 + $0x180] sm:$0xf] %vm2209_vm3, %v2808_v43  ;;  %v1331_v55 = vadd.f32 %v3344_v6, %v1330_v51  ;;  %v2747_v56 = vpack.c.bf16 %v1604_v46, %v1604_v46  ;;  %v1602_v58 = vmax.f32 %v1062_v38, %v1474_v48  ;;  %v1666_v59 = vmax.f32 %v1318_v39, %v1538_v49 }
 0x127   : > { %v2811_v57 = vpack.c.bf16 %v1668_v47, %v1668_v47  ;;  %v1607_v62 = vmax.f32 %v1083_v44, %v1479_v52  ;;  %v1671_v63 = vmax.f32 %v1339_v45, %v1543_v53  ;;  %v1477_v0 = vmul.f32 0.1, %v1075_v54  ;;  %v1077_v7 = vpop.f32.mrf.mxu0  ;;  %v1333_v8 = vpop.f32.mrf.mxu1 }
 0x128   : > { %v1541_v1 = vmul.f32 0.1, %v1331_v55  ;;  %2245 = vst.msk [vmem:[%s3355_s29 + $0x8c] sm:$0xf] %vm2209_vm3, %v2747_v56  ;;  %v2745_v2 = vpack.c.bf16 %v1602_v58, %v1602_v58  ;;  %v2809_v3 = vpack.c.bf16 %v1666_v59, %v1666_v59  ;;  %v1086_v4 = vadd.f32 %v2949_v60, %v3344_v6 }
 0x129   : > { %2309 = vst.msk [vmem:[%s3355_s29 + $0x18c] sm:$0xf] %vm2209_vm3, %v2811_v57  ;;  %v1342_v5 = vadd.f32 %v3013_v61, %v3344_v6  ;;  %v2750_v9 = vpack.c.bf16 %v1607_v62, %v1607_v62  ;;  %v2814_v10 = vpack.c.bf16 %v1671_v63, %v1671_v63  ;;  %v1605_v11 = vmax.f32 %v1075_v54, %v1477_v0  ;;  %v2952_v17 = vpop.f32.mrf.mxu0  ;;  %v3016_v18 = vpop.f32.mrf.mxu1  ;;  %v3608_v61 = vld [vmem:[%s3753_s2] ss:$0 sm:$0xff] }
 0x12a   : > { %v1669_v12 = vmax.f32 %v1331_v55, %v1541_v1  ;;  %2243 = vst.msk [vmem:[%s3355_s29 + $0x84] sm:$0xf] %vm2209_vm3, %v2745_v2  ;;  %2307 = vst.msk [vmem:[%s3355_s29 + $0x184] sm:$0xf] %vm2209_vm3, %v2809_v3  ;;  %v1480_v13 = vmul.f32 0.1, %v1086_v4  ;;  %v1078_v15 = vadd.f32 %v3344_v6, %v1077_v7  ;;  %v1334_v16 = vadd.f32 %v3344_v6, %v1333_v8 }
 0x12b   : > { %v1544_v14 = vmul.f32 0.1, %v1342_v5  ;;  %2248 = vst.msk [vmem:[%s3355_s29 + $0x98] sm:$0xf] %vm2209_vm3, %v2750_v9  ;;  %2312 = vst.msk [vmem:[%s3355_s29 + $0x198] sm:$0xf] %vm2209_vm3, %v2814_v10  ;;  %v2748_v19 = vpack.c.bf16 %v1605_v11, %v1605_v11  ;;  %v1099_v21 = vadd.f32 %v2952_v17, %v3344_v6  ;;  %v1355_v22 = vadd.f32 %v3016_v18, %v3344_v6  ;;  %v1090_v27 = vpop.f32.mrf.mxu0  ;;  %v1346_v28 = vpop.f32.mrf.mxu1 }
 0x12c   : > { %v2812_v20 = vpack.c.bf16 %v1669_v12, %v1669_v12  ;;  %v1608_v23 = vmax.f32 %v1086_v4, %v1480_v13  ;;  %v1478_v25 = vmul.f32 0.1, %v1078_v15  ;;  %v1542_v26 = vmul.f32 0.1, %v1334_v16 }
 0x12d   : > { %v1672_v24 = vmax.f32 %v1342_v5, %v1544_v14  ;;  %2246 = vst.msk [vmem:[%s3355_s29 + $0x90] sm:$0xf] %vm2209_vm3, %v2748_v19  ;;  %v1483_v29 = vmul.f32 0.1, %v1099_v21  ;;  %v1547_v30 = vmul.f32 0.1, %v1355_v22  ;;  %v1091_v31 = vadd.f32 %v3344_v6, %v1090_v27  ;;  %v2953_v37 = vpop.f32.mrf.mxu0  ;;  %v3017_v38 = vpop.f32.mrf.mxu1 }
 0x12e   : > { %2310 = vst.msk [vmem:[%s3355_s29 + $0x190] sm:$0xf] %vm2209_vm3, %v2812_v20  ;;  %v1347_v32 = vadd.f32 %v3344_v6, %v1346_v28  ;;  %v2751_v33 = vpack.c.bf16 %v1608_v23, %v1608_v23  ;;  %v1606_v35 = vmax.f32 %v1078_v15, %v1478_v25  ;;  %v1670_v36 = vmax.f32 %v1334_v16, %v1542_v26 }
 0x12f   : > { %v2815_v34 = vpack.c.bf16 %v1672_v24, %v1672_v24  ;;  %v1611_v39 = vmax.f32 %v1099_v21, %v1483_v29  ;;  %v1675_v40 = vmax.f32 %v1355_v22, %v1547_v30  ;;  %v1481_v41 = vmul.f32 0.1, %v1091_v31  ;;  %v1093_v47 = vpop.f32.mrf.mxu0  ;;  %v1349_v48 = vpop.f32.mrf.mxu1 }
 0x130   : > { %v1545_v42 = vmul.f32 0.1, %v1347_v32  ;;  %2249 = vst.msk [vmem:[%s3355_s29 + $0x9c] sm:$0xf] %vm2209_vm3, %v2751_v33  ;;  %v2749_v43 = vpack.c.bf16 %v1606_v35, %v1606_v35  ;;  %v2813_v44 = vpack.c.bf16 %v1670_v36, %v1670_v36  ;;  %v1102_v45 = vadd.f32 %v2953_v37, %v3344_v6 }
 0x131   : > { %2313 = vst.msk [vmem:[%s3355_s29 + $0x19c] sm:$0xf] %vm2209_vm3, %v2815_v34  ;;  %v1358_v46 = vadd.f32 %v3017_v38, %v3344_v6  ;;  %v2754_v49 = vpack.c.bf16 %v1611_v39, %v1611_v39  ;;  %v2818_v50 = vpack.c.bf16 %v1675_v40, %v1675_v40  ;;  %v1609_v51 = vmax.f32 %v1091_v31, %v1481_v41  ;;  %v2956_v57 = vpop.f32.mrf.mxu0  ;;  %v3020_v58 = vpop.f32.mrf.mxu1 }
 0x132   : > { %v1673_v52 = vmax.f32 %v1347_v32, %v1545_v42  ;;  %2247 = vst.msk [vmem:[%s3355_s29 + $0x94] sm:$0xf] %vm2209_vm3, %v2749_v43  ;;  %2311 = vst.msk [vmem:[%s3355_s29 + $0x194] sm:$0xf] %vm2209_vm3, %v2813_v44  ;;  %v1484_v53 = vmul.f32 0.1, %v1102_v45  ;;  %v1094_v55 = vadd.f32 %v3344_v6, %v1093_v47  ;;  %v1350_v56 = vadd.f32 %v3344_v6, %v1349_v48 }
 0x133   : > { %v1548_v54 = vmul.f32 0.1, %v1358_v46  ;;  %2252 = vst.msk [vmem:[%s3355_s29 + $0xa8] sm:$0xf] %vm2209_vm3, %v2754_v49  ;;  %2316 = vst.msk [vmem:[%s3355_s29 + $0x1a8] sm:$0xf] %vm2209_vm3, %v2818_v50  ;;  %v2752_v59 = vpack.c.bf16 %v1609_v51, %v1609_v51  ;;  %v1115_v62 = vadd.f32 %v3608_v61, %v2956_v57  ;;  %v1371_v63 = vadd.f32 %v3608_v61, %v3020_v58  ;;  %v1106_v3 = vpop.f32.mrf.mxu0  ;;  %v1362_v4 = vpop.f32.mrf.mxu1 }
 0x134   : > { %v2816_v60 = vpack.c.bf16 %v1673_v52, %v1673_v52  ;;  %v1612_v6 = vmax.f32 %v1102_v45, %v1484_v53  ;;  %v1482_v1 = vmul.f32 0.1, %v1094_v55  ;;  %v1546_v2 = vmul.f32 0.1, %v1350_v56 }
 0x135   : > { %v1676_v0 = vmax.f32 %v1358_v46, %v1548_v54  ;;  %2250 = vst.msk [vmem:[%s3355_s29 + $0xa0] sm:$0xf] %vm2209_vm3, %v2752_v59  ;;  %v1487_v5 = vmul.f32 0.1, %v1115_v62  ;;  %v1551_v7 = vmul.f32 0.1, %v1371_v63  ;;  %v1107_v8 = vadd.f32 %v3608_v61, %v1106_v3  ;;  %v2957_v14 = vpop.f32.mrf.mxu0  ;;  %v3021_v15 = vpop.f32.mrf.mxu1 }
 0x136   : > { %2314 = vst.msk [vmem:[%s3355_s29 + $0x1a0] sm:$0xf] %vm2209_vm3, %v2816_v60  ;;  %v1363_v9 = vadd.f32 %v3608_v61, %v1362_v4  ;;  %v2755_v10 = vpack.c.bf16 %v1612_v6, %v1612_v6  ;;  %v1610_v12 = vmax.f32 %v1094_v55, %v1482_v1  ;;  %v1674_v13 = vmax.f32 %v1350_v56, %v1546_v2 }
 0x137   : > { %v2819_v11 = vpack.c.bf16 %v1676_v0, %v1676_v0  ;;  %v1615_v16 = vmax.f32 %v1115_v62, %v1487_v5  ;;  %v1679_v17 = vmax.f32 %v1371_v63, %v1551_v7  ;;  %v1485_v18 = vmul.f32 0.1, %v1107_v8  ;;  %v1109_v24 = vpop.f32.mrf.mxu0  ;;  %v1365_v25 = vpop.f32.mrf.mxu1 }
 0x138   : > { %v1549_v19 = vmul.f32 0.1, %v1363_v9  ;;  %2253 = vst.msk [vmem:[%s3355_s29 + $0xac] sm:$0xf] %vm2209_vm3, %v2755_v10  ;;  %v2753_v20 = vpack.c.bf16 %v1610_v12, %v1610_v12  ;;  %v2817_v21 = vpack.c.bf16 %v1674_v13, %v1674_v13  ;;  %v1118_v22 = vadd.f32 %v3608_v61, %v2957_v14 }
 0x139   : > { %2317 = vst.msk [vmem:[%s3355_s29 + $0x1ac] sm:$0xf] %vm2209_vm3, %v2819_v11  ;;  %v1374_v23 = vadd.f32 %v3608_v61, %v3021_v15  ;;  %v2758_v26 = vpack.c.bf16 %v1615_v16, %v1615_v16  ;;  %v2822_v27 = vpack.c.bf16 %v1679_v17, %v1679_v17  ;;  %v1613_v28 = vmax.f32 %v1107_v8, %v1485_v18  ;;  %v2960_v34 = vpop.f32.mrf.mxu0  ;;  %v3024_v35 = vpop.f32.mrf.mxu1 }
 0x13a   : > { %v1677_v29 = vmax.f32 %v1363_v9, %v1549_v19  ;;  %2251 = vst.msk [vmem:[%s3355_s29 + $0xa4] sm:$0xf] %vm2209_vm3, %v2753_v20  ;;  %2315 = vst.msk [vmem:[%s3355_s29 + $0x1a4] sm:$0xf] %vm2209_vm3, %v2817_v21  ;;  %v1488_v30 = vmul.f32 0.1, %v1118_v22  ;;  %v1110_v32 = vadd.f32 %v3608_v61, %v1109_v24  ;;  %v1366_v33 = vadd.f32 %v3608_v61, %v1365_v25 }
 0x13b   : > { %v1552_v31 = vmul.f32 0.1, %v1374_v23  ;;  %2256 = vst.msk [vmem:[%s3355_s29 + $0xb8] sm:$0xf] %vm2209_vm3, %v2758_v26  ;;  %2320 = vst.msk [vmem:[%s3355_s29 + $0x1b8] sm:$0xf] %vm2209_vm3, %v2822_v27  ;;  %v2756_v36 = vpack.c.bf16 %v1613_v28, %v1613_v28  ;;  %v1131_v38 = vadd.f32 %v3608_v61, %v2960_v34  ;;  %v1387_v39 = vadd.f32 %v3608_v61, %v3024_v35  ;;  %v1122_v44 = vpop.f32.mrf.mxu0  ;;  %v1378_v45 = vpop.f32.mrf.mxu1 }
 0x13c   : > { %v2820_v37 = vpack.c.bf16 %v1677_v29, %v1677_v29  ;;  %v1616_v40 = vmax.f32 %v1118_v22, %v1488_v30  ;;  %v1486_v42 = vmul.f32 0.1, %v1110_v32  ;;  %v1550_v43 = vmul.f32 0.1, %v1366_v33 }
 0x13d   : > { %v1680_v41 = vmax.f32 %v1374_v23, %v1552_v31  ;;  %2254 = vst.msk [vmem:[%s3355_s29 + $0xb0] sm:$0xf] %vm2209_vm3, %v2756_v36  ;;  %v1491_v46 = vmul.f32 0.1, %v1131_v38  ;;  %v1555_v47 = vmul.f32 0.1, %v1387_v39  ;;  %v1123_v48 = vadd.f32 %v3608_v61, %v1122_v44  ;;  %v2961_v54 = vpop.f32.mrf.mxu0  ;;  %v3025_v55 = vpop.f32.mrf.mxu1 }
 0x13e   : > { %2318 = vst.msk [vmem:[%s3355_s29 + $0x1b0] sm:$0xf] %vm2209_vm3, %v2820_v37  ;;  %v1379_v49 = vadd.f32 %v3608_v61, %v1378_v45  ;;  %v2759_v50 = vpack.c.bf16 %v1616_v40, %v1616_v40  ;;  %v1614_v52 = vmax.f32 %v1110_v32, %v1486_v42  ;;  %v1678_v53 = vmax.f32 %v1366_v33, %v1550_v43 }
 0x13f   : > { %v2823_v51 = vpack.c.bf16 %v1680_v41, %v1680_v41  ;;  %v1619_v56 = vmax.f32 %v1131_v38, %v1491_v46  ;;  %v1683_v57 = vmax.f32 %v1387_v39, %v1555_v47  ;;  %v1489_v58 = vmul.f32 0.1, %v1123_v48  ;;  %v1125_v0 = vpop.f32.mrf.mxu0  ;;  %v1381_v1 = vpop.f32.mrf.mxu1 }
 0x140   : > { %v1553_v59 = vmul.f32 0.1, %v1379_v49  ;;  %2257 = vst.msk [vmem:[%s3355_s29 + $0xbc] sm:$0xf] %vm2209_vm3, %v2759_v50  ;;  %v2757_v60 = vpack.c.bf16 %v1614_v52, %v1614_v52  ;;  %v2821_v62 = vpack.c.bf16 %v1678_v53, %v1678_v53  ;;  %v1134_v63 = vadd.f32 %v3608_v61, %v2961_v54 }
 0x141   : > { %2321 = vst.msk [vmem:[%s3355_s29 + $0x1bc] sm:$0xf] %vm2209_vm3, %v2823_v51  ;;  %v1390_v6 = vadd.f32 %v3608_v61, %v3025_v55  ;;  %v2762_v2 = vpack.c.bf16 %v1619_v56, %v1619_v56  ;;  %v2826_v3 = vpack.c.bf16 %v1683_v57, %v1683_v57  ;;  %v1617_v4 = vmax.f32 %v1123_v48, %v1489_v58  ;;  %v2964_v11 = vpop.f32.mrf.mxu0  ;;  %v3028_v12 = vpop.f32.mrf.mxu1 }
 0x142   : > { %v1681_v5 = vmax.f32 %v1379_v49, %v1553_v59  ;;  %2255 = vst.msk [vmem:[%s3355_s29 + $0xb4] sm:$0xf] %vm2209_vm3, %v2757_v60  ;;  %2319 = vst.msk [vmem:[%s3355_s29 + $0x1b4] sm:$0xf] %vm2209_vm3, %v2821_v62  ;;  %v1492_v7 = vmul.f32 0.1, %v1134_v63  ;;  %v1126_v9 = vadd.f32 %v3608_v61, %v1125_v0  ;;  %v1382_v10 = vadd.f32 %v3608_v61, %v1381_v1 }
 0x143   : > { %v1556_v8 = vmul.f32 0.1, %v1390_v6  ;;  %2260 = vst.msk [vmem:[%s3355_s29 + $0xc8] sm:$0xf] %vm2209_vm3, %v2762_v2  ;;  %2324 = vst.msk [vmem:[%s3355_s29 + $0x1c8] sm:$0xf] %vm2209_vm3, %v2826_v3  ;;  %v2760_v13 = vpack.c.bf16 %v1617_v4, %v1617_v4  ;;  %v1147_v15 = vadd.f32 %v3608_v61, %v2964_v11  ;;  %v1403_v16 = vadd.f32 %v3608_v61, %v3028_v12  ;;  %v1138_v21 = vpop.f32.mrf.mxu0  ;;  %v1394_v22 = vpop.f32.mrf.mxu1 }
 0x144   : > { %v2824_v14 = vpack.c.bf16 %v1681_v5, %v1681_v5  ;;  %v1620_v17 = vmax.f32 %v1134_v63, %v1492_v7  ;;  %v1490_v19 = vmul.f32 0.1, %v1126_v9  ;;  %v1554_v20 = vmul.f32 0.1, %v1382_v10 }
 0x145   : > { %v1684_v18 = vmax.f32 %v1390_v6, %v1556_v8  ;;  %2258 = vst.msk [vmem:[%s3355_s29 + $0xc0] sm:$0xf] %vm2209_vm3, %v2760_v13  ;;  %v1495_v23 = vmul.f32 0.1, %v1147_v15  ;;  %v1559_v24 = vmul.f32 0.1, %v1403_v16  ;;  %v1139_v25 = vadd.f32 %v3608_v61, %v1138_v21  ;;  %v2965_v31 = vpop.f32.mrf.mxu0  ;;  %v3029_v32 = vpop.f32.mrf.mxu1 }
 0x146   : > { %2322 = vst.msk [vmem:[%s3355_s29 + $0x1c0] sm:$0xf] %vm2209_vm3, %v2824_v14  ;;  %v1395_v26 = vadd.f32 %v3608_v61, %v1394_v22  ;;  %v2763_v27 = vpack.c.bf16 %v1620_v17, %v1620_v17  ;;  %v1618_v29 = vmax.f32 %v1126_v9, %v1490_v19  ;;  %v1682_v30 = vmax.f32 %v1382_v10, %v1554_v20 }
 0x147   : > { %v2827_v28 = vpack.c.bf16 %v1684_v18, %v1684_v18  ;;  %v1623_v33 = vmax.f32 %v1147_v15, %v1495_v23  ;;  %v1687_v34 = vmax.f32 %v1403_v16, %v1559_v24  ;;  %v1493_v35 = vmul.f32 0.1, %v1139_v25  ;;  %v1141_v41 = vpop.f32.mrf.mxu0  ;;  %v1397_v42 = vpop.f32.mrf.mxu1 }
 0x148   : > { %v1557_v36 = vmul.f32 0.1, %v1395_v26  ;;  %2261 = vst.msk [vmem:[%s3355_s29 + $0xcc] sm:$0xf] %vm2209_vm3, %v2763_v27  ;;  %v2761_v37 = vpack.c.bf16 %v1618_v29, %v1618_v29  ;;  %v2825_v38 = vpack.c.bf16 %v1682_v30, %v1682_v30  ;;  %v1150_v39 = vadd.f32 %v3608_v61, %v2965_v31 }
 0x149   : > { %2325 = vst.msk [vmem:[%s3355_s29 + $0x1cc] sm:$0xf] %vm2209_vm3, %v2827_v28  ;;  %v1406_v40 = vadd.f32 %v3608_v61, %v3029_v32  ;;  %v2766_v43 = vpack.c.bf16 %v1623_v33, %v1623_v33  ;;  %v2830_v44 = vpack.c.bf16 %v1687_v34, %v1687_v34  ;;  %v1621_v45 = vmax.f32 %v1139_v25, %v1493_v35  ;;  %v2968_v51 = vpop.f32.mrf.mxu0  ;;  %v3032_v52 = vpop.f32.mrf.mxu1 }
 0x14a   : > { %v1685_v46 = vmax.f32 %v1395_v26, %v1557_v36  ;;  %2259 = vst.msk [vmem:[%s3355_s29 + $0xc4] sm:$0xf] %vm2209_vm3, %v2761_v37  ;;  %2323 = vst.msk [vmem:[%s3355_s29 + $0x1c4] sm:$0xf] %vm2209_vm3, %v2825_v38  ;;  %v1496_v47 = vmul.f32 0.1, %v1150_v39  ;;  %v1142_v49 = vadd.f32 %v3608_v61, %v1141_v41  ;;  %v1398_v50 = vadd.f32 %v3608_v61, %v1397_v42 }
 0x14b   : > { %v1560_v48 = vmul.f32 0.1, %v1406_v40  ;;  %2264 = vst.msk [vmem:[%s3355_s29 + $0xd8] sm:$0xf] %vm2209_vm3, %v2766_v43  ;;  %2328 = vst.msk [vmem:[%s3355_s29 + $0x1d8] sm:$0xf] %vm2209_vm3, %v2830_v44  ;;  %v2764_v53 = vpack.c.bf16 %v1621_v45, %v1621_v45  ;;  %v1163_v55 = vadd.f32 %v3608_v61, %v2968_v51  ;;  %v1419_v56 = vadd.f32 %v3608_v61, %v3032_v52  ;;  %v1154_v62 = vpop.f32.mrf.mxu0  ;;  %v1410_v63 = vpop.f32.mrf.mxu1 }
 0x14c   : > { %v2828_v54 = vpack.c.bf16 %v1685_v46, %v1685_v46  ;;  %v1624_v57 = vmax.f32 %v1150_v39, %v1496_v47  ;;  %v1494_v59 = vmul.f32 0.1, %v1142_v49  ;;  %v1558_v60 = vmul.f32 0.1, %v1398_v50 }
 0x14d   : > { %v1688_v58 = vmax.f32 %v1406_v40, %v1560_v48  ;;  %2262 = vst.msk [vmem:[%s3355_s29 + $0xd0] sm:$0xf] %vm2209_vm3, %v2764_v53  ;;  %v1499_v6 = vmul.f32 0.1, %v1163_v55  ;;  %v1563_v0 = vmul.f32 0.1, %v1419_v56  ;;  %v1155_v1 = vadd.f32 %v3608_v61, %v1154_v62  ;;  %v2969_v8 = vpop.f32.mrf.mxu0  ;;  %v3033_v9 = vpop.f32.mrf.mxu1 }
 0x14e   : > { %2326 = vst.msk [vmem:[%s3355_s29 + $0x1d0] sm:$0xf] %vm2209_vm3, %v2828_v54  ;;  %v1411_v2 = vadd.f32 %v3608_v61, %v1410_v63  ;;  %v2767_v3 = vpack.c.bf16 %v1624_v57, %v1624_v57  ;;  %v1622_v5 = vmax.f32 %v1142_v49, %v1494_v59  ;;  %v1686_v7 = vmax.f32 %v1398_v50, %v1558_v60 }
 0x14f   : > { %v2831_v4 = vpack.c.bf16 %v1688_v58, %v1688_v58  ;;  %v1627_v10 = vmax.f32 %v1163_v55, %v1499_v6  ;;  %v1691_v11 = vmax.f32 %v1419_v56, %v1563_v0  ;;  %v1497_v12 = vmul.f32 0.1, %v1155_v1  ;;  %v1157_v18 = vpop.f32.mrf.mxu0  ;;  %v1413_v19 = vpop.f32.mrf.mxu1 }
 0x150   : > { %v1561_v13 = vmul.f32 0.1, %v1411_v2  ;;  %2265 = vst.msk [vmem:[%s3355_s29 + $0xdc] sm:$0xf] %vm2209_vm3, %v2767_v3  ;;  %v2765_v14 = vpack.c.bf16 %v1622_v5, %v1622_v5  ;;  %v2829_v15 = vpack.c.bf16 %v1686_v7, %v1686_v7  ;;  %v1166_v16 = vadd.f32 %v3608_v61, %v2969_v8 }
 0x151   : > { %2329 = vst.msk [vmem:[%s3355_s29 + $0x1dc] sm:$0xf] %vm2209_vm3, %v2831_v4  ;;  %v1422_v17 = vadd.f32 %v3608_v61, %v3033_v9  ;;  %v2770_v20 = vpack.c.bf16 %v1627_v10, %v1627_v10  ;;  %v2834_v21 = vpack.c.bf16 %v1691_v11, %v1691_v11  ;;  %v1625_v22 = vmax.f32 %v1155_v1, %v1497_v12  ;;  %v2972_v28 = vpop.f32.mrf.mxu0  ;;  %v3036_v29 = vpop.f32.mrf.mxu1 }
 0x152   : > { %v1689_v23 = vmax.f32 %v1411_v2, %v1561_v13  ;;  %2263 = vst.msk [vmem:[%s3355_s29 + $0xd4] sm:$0xf] %vm2209_vm3, %v2765_v14  ;;  %2327 = vst.msk [vmem:[%s3355_s29 + $0x1d4] sm:$0xf] %vm2209_vm3, %v2829_v15  ;;  %v1500_v24 = vmul.f32 0.1, %v1166_v16  ;;  %v1158_v26 = vadd.f32 %v3608_v61, %v1157_v18  ;;  %v1414_v27 = vadd.f32 %v3608_v61, %v1413_v19 }
 0x153   : > { %v1564_v25 = vmul.f32 0.1, %v1422_v17  ;;  %2268 = vst.msk [vmem:[%s3355_s29 + $0xe8] sm:$0xf] %vm2209_vm3, %v2770_v20  ;;  %2332 = vst.msk [vmem:[%s3355_s29 + $0x1e8] sm:$0xf] %vm2209_vm3, %v2834_v21  ;;  %v2768_v30 = vpack.c.bf16 %v1625_v22, %v1625_v22  ;;  %v1179_v32 = vadd.f32 %v3608_v61, %v2972_v28  ;;  %v1435_v33 = vadd.f32 %v3608_v61, %v3036_v29  ;;  %v1170_v38 = vpop.f32.mrf.mxu0  ;;  %v1426_v39 = vpop.f32.mrf.mxu1 }
 0x154   : > { %v2832_v31 = vpack.c.bf16 %v1689_v23, %v1689_v23  ;;  %v1628_v34 = vmax.f32 %v1166_v16, %v1500_v24  ;;  %v1498_v36 = vmul.f32 0.1, %v1158_v26  ;;  %v1562_v37 = vmul.f32 0.1, %v1414_v27 }
 0x155   : > { %v1692_v35 = vmax.f32 %v1422_v17, %v1564_v25  ;;  %2266 = vst.msk [vmem:[%s3355_s29 + $0xe0] sm:$0xf] %vm2209_vm3, %v2768_v30  ;;  %v1503_v40 = vmul.f32 0.1, %v1179_v32  ;;  %v1567_v41 = vmul.f32 0.1, %v1435_v33  ;;  %v1171_v42 = vadd.f32 %v3608_v61, %v1170_v38  ;;  %v2973_v48 = vpop.f32.mrf.mxu0  ;;  %v3037_v49 = vpop.f32.mrf.mxu1 }
 0x156   : > { %2330 = vst.msk [vmem:[%s3355_s29 + $0x1e0] sm:$0xf] %vm2209_vm3, %v2832_v31  ;;  %v1427_v43 = vadd.f32 %v3608_v61, %v1426_v39  ;;  %v2771_v44 = vpack.c.bf16 %v1628_v34, %v1628_v34  ;;  %v1626_v46 = vmax.f32 %v1158_v26, %v1498_v36  ;;  %v1690_v47 = vmax.f32 %v1414_v27, %v1562_v37 }
 0x157   : > { %v2835_v45 = vpack.c.bf16 %v1692_v35, %v1692_v35  ;;  %v1631_v50 = vmax.f32 %v1179_v32, %v1503_v40  ;;  %v1695_v51 = vmax.f32 %v1435_v33, %v1567_v41  ;;  %v1501_v52 = vmul.f32 0.1, %v1171_v42  ;;  %v1173_v58 = vpop.f32.mrf.mxu0  ;;  %v1429_v59 = vpop.f32.mrf.mxu1 }
 0x158   : > { %v1565_v53 = vmul.f32 0.1, %v1427_v43  ;;  %2269 = vst.msk [vmem:[%s3355_s29 + $0xec] sm:$0xf] %vm2209_vm3, %v2771_v44  ;;  %v2769_v54 = vpack.c.bf16 %v1626_v46, %v1626_v46  ;;  %v2833_v55 = vpack.c.bf16 %v1690_v47, %v1690_v47  ;;  %v1182_v56 = vadd.f32 %v3608_v61, %v2973_v48 }
 0x159   : > { %2333 = vst.msk [vmem:[%s3355_s29 + $0x1ec] sm:$0xf] %vm2209_vm3, %v2835_v45  ;;  %v1438_v57 = vadd.f32 %v3608_v61, %v3037_v49  ;;  %v2774_v60 = vpack.c.bf16 %v1631_v50, %v1631_v50  ;;  %v2838_v62 = vpack.c.bf16 %v1695_v51, %v1695_v51  ;;  %v1629_v63 = vmax.f32 %v1171_v42, %v1501_v52 }
 0x15a   : > { %v1693_v6 = vmax.f32 %v1427_v43, %v1565_v53  ;;  %2267 = vst.msk [vmem:[%s3355_s29 + $0xe4] sm:$0xf] %vm2209_vm3, %v2769_v54  ;;  %2331 = vst.msk [vmem:[%s3355_s29 + $0x1e4] sm:$0xf] %vm2209_vm3, %v2833_v55  ;;  %v1504_v0 = vmul.f32 0.1, %v1182_v56  ;;  %v1174_v2 = vadd.f32 %v3608_v61, %v1173_v58  ;;  %v1430_v3 = vadd.f32 %v3608_v61, %v1429_v59 }
 0x15b   : > { %v1568_v1 = vmul.f32 0.1, %v1438_v57  ;;  %2272 = vst.msk [vmem:[%s3355_s29 + $0xf8] sm:$0xf] %vm2209_vm3, %v2774_v60  ;;  %2336 = vst.msk [vmem:[%s3355_s29 + $0x1f8] sm:$0xf] %vm2209_vm3, %v2838_v62  ;;  %v2772_v4 = vpack.c.bf16 %v1629_v63, %v1629_v63 }
 0x15c   : > { %v2836_v5 = vpack.c.bf16 %v1693_v6, %v1693_v6  ;;  %v1632_v7 = vmax.f32 %v1182_v56, %v1504_v0  ;;  %v1502_v9 = vmul.f32 0.1, %v1174_v2  ;;  %v1566_v10 = vmul.f32 0.1, %v1430_v3 }
 0x15d   : > { %v1696_v8 = vmax.f32 %v1438_v57, %v1568_v1  ;;  %2270 = vst.msk [vmem:[%s3355_s29 + $0xf0] sm:$0xf] %vm2209_vm3, %v2772_v4 }
 0x15e   : > { %2334 = vst.msk [vmem:[%s3355_s29 + $0x1f0] sm:$0xf] %vm2209_vm3, %v2836_v5  ;;  %v2775_v11 = vpack.c.bf16 %v1632_v7, %v1632_v7  ;;  %v1630_v61 = vmax.f32 %v1174_v2, %v1502_v9  ;;  %v1694_v13 = vmax.f32 %v1430_v3, %v1566_v10 }
 0x15f   : > { %v2839_v12 = vpack.c.bf16 %v1696_v8, %v1696_v8 }
 0x160   : > { %2273 = vst.msk [vmem:[%s3355_s29 + $0xfc] sm:$0xf] %vm2209_vm3, %v2775_v11  ;;  %v2773_v14 = vpack.c.bf16 %v1630_v61, %v1630_v61  ;;  %v2837_v15 = vpack.c.bf16 %v1694_v13, %v1694_v13 }
 0x161   : > { %2337 = vst.msk [vmem:[%s3355_s29 + $0x1fc] sm:$0xf] %vm2209_vm3, %v2839_v12 }
 0x162   : > { %2271 = vst.msk [vmem:[%s3355_s29 + $0xf4] sm:$0xf] %vm2209_vm3, %v2773_v14  ;;  %2335 = vst.msk [vmem:[%s3355_s29 + $0x1f4] sm:$0xf] %vm2209_vm3, %v2837_v15 }
 0x163 PF: > { %s13_s14 = sadd.s32 1, %s3156_s14   ;;  %s3755_s12 = smov %s3152_s13 }
 0x164   : > { %p10_p5 = scmp.ge.s32.totalorder %s13_s14, 4   ;;  %s3756_s13 = smov %s3758_s15 }
 0x166   :  { %12 = sbr.rel (!%p10_p5) target bundleno = 2 (0x2), region = 68 }

</bundles_post_ra>
